<compile_context>
chip_gen: v5e
topology: v5e:2x2
jax: 0.10.0
libtpu: 0.0.40
codegen_flags: <defaults>
</compile_context>

<pallas_src>
import jax
import jax.numpy as jnp
import numpy as np
from jax.experimental import pallas as pl
from jax.experimental.pallas import tpu as pltpu

KSIZE = 5
STRIDE = 2
PAD = 2
BN_EPS = 1e-5
NORM_EPS = 1e-12

EXPANSION = 4
BLOCKS = 4
EMBED_DIM = 16
IN_HW = 32
NPAD = 8  # batch padded to one full sublane group (8) for aligned slices

H_IN = [IN_HW // (2 ** b) for b in range(BLOCKS)]                # [32, 16, 8, 4]
HO = [IN_HW // (2 ** (b + 1)) for b in range(BLOCKS)]            # [16, 8, 4, 2]
CIN = [1] + [EXPANSION * (2 ** b) for b in range(BLOCKS - 1)]    # [1, 4, 8, 16]
COUT = [EXPANSION * (2 ** b) for b in range(BLOCKS)]             # [4, 8, 16, 32]

ROW_W = 64                  # content lanes of one padded image row (W_in*Cin <= 64)
QUAD_W = 4 * ROW_W          # 256: one plane row packs 4 consecutive padded rows
PAIR_W = 2 * ROW_W          # 128: one output row-pair (even|odd), lane-dense

for _b in range(BLOCKS):
    assert H_IN[_b] * CIN[_b] <= ROW_W          # input row fits one 64-lane quarter
    assert HO[_b] * COUT[_b] == ROW_W           # output row fills exactly 64 lanes
    assert (H_IN[_b] + 2 * PAD) % 4 == 0        # padded rows group into quads

NQUAD = [H_IN[b] // 4 + 1 for b in range(BLOCKS)]   # quad-rows per padded image


# ---------------------------------------------------------------------------
# Fused Pallas kernel: 4x(conv+BN+ReLU) -> (identity pool) -> fc -> normalize
# ---------------------------------------------------------------------------
def encoder_kernel(p0_ref, t_ref, bias_ref, fcw_ref, fcb_ref, out_ref,
                   p1, p2, p3):
    n = out_ref.shape[0]                      # padded batch (8)
    planes = [p0_ref, p1, p2, p3]

    # Zero ONLY the vertical-padding halves of the scratch planes; the interior
    # is fully overwritten by the pair-scatter from the previous block.
    zeros_half = jnp.zeros((n, PAIR_W), jnp.float32)
    for b in range(1, BLOCKS):
        last = (NQUAD[b] - 1) * n
        planes[b][0:n, 0:PAIR_W] = zeros_half                  # padded rows 0, 1
        planes[b][last:last + n, PAIR_W:QUAD_W] = zeros_half   # padded rows Win+2, Win+3

    y = None
    for b in range(BLOCKS):
        wo = HO[b]
        mrows = (wo // 2) * n                 # matmul M, rows ordered (pair, sample)
        src = planes[b]
        # output pair m reads quad-rows m and m+1 -> two contiguous lane-dense slices
        x_lo = src[0:mrows, :]
        x_hi = src[n:n + mrows, :]
        acc = jnp.dot(x_lo, t_ref[2 * b], preferred_element_type=jnp.float32)
        acc = acc + jnp.dot(x_hi, t_ref[2 * b + 1],
                            preferred_element_type=jnp.float32)
        # BN scale is folded into T; add folded bias (conv bias + BN shift), ReLU.
        y = jnp.maximum(acc + bias_ref[b], 0.0)

        if b < BLOCKS - 1:
            # Scatter output pairs directly into the next block's quad layout:
            # each store is one aligned, unmasked (8,128) vreg.
            dst = planes[b + 1]
            for t in range(wo // 4):
                # even pair 2t   -> padded rows 4t+2,4t+3: quad-row t,   hi half
                dst[t * n:(t + 1) * n, PAIR_W:QUAD_W] = \
                    y[(2 * t) * n:(2 * t + 1) * n, :]
                # odd pair 2t+1  -> padded rows 4t+4,4t+5: quad-row t+1, lo half
                dst[(t + 1) * n:(t + 2) * n, 0:PAIR_W] = \
                    y[(2 * t + 1) * n:(2 * t + 2) * n, :]

    # Final block output y: (n, 128), lanes ordered (i, j, c) over the 2x2x32 map.
    # AdaptiveAvgPool2d([2,2]) is the identity here; the NCHW flatten + Linear
    # are folded into the pre-permuted fcw (128, E) -> single K=128 dot.
    emb = jnp.dot(y, fcw_ref[...], preferred_element_type=jnp.float32) + fcb_ref[...]
    # F.normalize(p=2, dim=1, eps=1e-12)
    nrm = jnp.sqrt(jnp.sum(emb * emb, axis=-1, keepdims=True))
    out_ref[...] = emb / jnp.maximum(nrm, NORM_EPS)


# ---------------------------------------------------------------------------
# Wrapper: tiny JAX glue (pad + quad-row packing of the raw input) + one call
# ---------------------------------------------------------------------------
def encoder_forward(x_nchw, params):
    """x_nchw: (N, 1, 32, 32) f32 -> (N, EMBED_DIM) L2-normalized embeddings."""
    t_all, bias_all, fcw, fcb = params
    batch = x_nchw.shape[0]
    assert x_nchw.shape[1:] == (1, IN_HW, IN_HW) and batch <= NPAD

    # Glue on the 8 KB raw input: drop channel dim, pad batch to 8, add the
    # 2-row vertical conv padding, pad rows to 64 lanes, then group padded rows
    # into quads of 4 -> lane-dense 256-wide plane, rows ordered (quad, sample).
    x_hw = x_nchw[:, 0, :, :]
    xp = jnp.pad(x_hw, ((0, NPAD - batch), (PAD, PAD), (0, ROW_W - IN_HW)))
    plane0 = (xp.reshape(NPAD, NQUAD[0], 4, ROW_W)
                .transpose(1, 0, 2, 3)
                .reshape(NQUAD[0] * NPAD, QUAD_W))

    scratch = [pltpu.VMEM((NQUAD[b] * NPAD, QUAD_W), jnp.float32)
               for b in range(1, BLOCKS)]

    flops = sum(2 * 2 * ((HO[b] // 2) * NPAD) * QUAD_W * PAIR_W
                for b in range(BLOCKS)) + 2 * NPAD * PAIR_W * EMBED_DIM
    bytes_accessed = 4 * (plane0.size + t_all.size + bias_all.size
                          + fcw.size + fcb.size + NPAD * EMBED_DIM)

    out = pl.pallas_call(
        encoder_kernel,
        out_shape=jax.ShapeDtypeStruct((NPAD, EMBED_DIM), jnp.float32),
        in_specs=[pl.BlockSpec(memory_space=pltpu.MemorySpace.VMEM)] * 5,
        out_specs=pl.BlockSpec(memory_space=pltpu.MemorySpace.VMEM),
        scratch_shapes=scratch,
        cost_estimate=pl.CostEstimate(flops=int(flops), transcendentals=NPAD,
                                      bytes_accessed=int(bytes_accessed)),
    )(plane0, t_all, bias_all, fcw, fcb)
    return out[:batch]


# ---------------------------------------------------------------------------
# Parameter init (synthetic, PyTorch layouts) and one-time packing
# ---------------------------------------------------------------------------
def init_encoder_params(key):
    raw = []
    for b in range(BLOCKS):
        cin, cout = CIN[b], COUT[b]
        key, k1, k2, k3, k4, k5, k6 = jax.random.split(key, 7)
        raw.append(dict(
            w=np.asarray(0.1 * jax.random.normal(k1, (cout, cin, KSIZE, KSIZE), jnp.float32)),
            cb=np.asarray(0.1 * jax.random.normal(k2, (cout,), jnp.float32)),
            gamma=np.asarray(1.0 + 0.1 * jax.random.normal(k3, (cout,), jnp.float32)),
            beta=np.asarray(0.1 * jax.random.normal(k4, (cout,), jnp.float32)),
            mean=np.asarray(0.1 * jax.random.normal(k5, (cout,), jnp.float32)),
            var=np.asarray(0.5 + jnp.abs(jax.random.normal(k6, (cout,), jnp.float32))),
        ))
    key, kf1, kf2 = jax.random.split(key, 3)
    fc_in = EXPANSION * BLOCKS * 2 * 2 * 2  # 128 (== flattened conv output for blocks=4)
    fc_w = np.asarray(0.05 * jax.random.normal(kf1, (EMBED_DIM, fc_in), jnp.float32))
    fc_b = np.asarray(0.05 * jax.random.normal(kf2, (EMBED_DIM,), jnp.float32))
    return raw, fc_w, fc_b


def pack_params(raw, fc_w, fc_b):
    """Fold BN (eval) + conv bias; build quad-row Toeplitz matmul weights."""
    t_all = np.zeros((BLOCKS * 2, QUAD_W, PAIR_W), np.float32)
    bias_all = np.zeros((BLOCKS, 1, PAIR_W), np.float32)
    for b in range(BLOCKS):
        cin, cout, wo, win = CIN[b], COUT[b], HO[b], H_IN[b]
        p = raw[b]
        s = p["gamma"] / np.sqrt(p["var"] + BN_EPS)          # BN scale
        w_s = p["w"] * s[:, None, None, None]                # fold BN scale into conv W
        bias_all[b, 0, :] = np.tile((p["cb"] - p["mean"]) * s + p["beta"], 2 * wo)
        # Output pair m lives in columns (par, j, c); it reads quad-rows m (part=0)
        # and m+1 (part=1).  Padded row in quad = 4*part + pq; output row 2m+par
        # needs padded row 4m + 2*par + kh  =>  kh = 4*part + pq - 2*par.
        for part in range(2):
            for par in range(2):
                for pq in range(4):
                    kh = 4 * part + pq - 2 * par
                    if not (0 <= kh < KSIZE):
                        continue
                    for j in range(wo):
                        for kw in range(KSIZE):
                            wi = 2 * j + kw - PAD           # input content column
                            if 0 <= wi < win:               # horizontal pad taps -> 0
                                t_all[2 * b + part,
                                      ROW_W * pq + wi * cin: ROW_W * pq + (wi + 1) * cin,
                                      ROW_W * par + j * cout: ROW_W * par + (j + 1) * cout] \
                                    = w_s[:, :, kh, kw].T

    # fc: PyTorch flatten index c*4 + i*2 + j  ->  our lane index i*64 + j*Clast + c.
    c_last = COUT[-1]
    fcw = np.zeros((PAIR_W, EMBED_DIM), np.float32)
    for i in range(2):
        for j in range(2):
            for c in range(c_last):
                fcw[i * ROW_W + j * c_last + c, :] = fc_w[:, c * 4 + i * 2 + j]

    return (jnp.asarray(t_all), jnp.asarray(bias_all),
            jnp.asarray(fcw), jnp.asarray(fc_b.reshape(1, EMBED_DIM)))


# ---------------------------------------------------------------------------
# Pure-JAX reference (eval-mode PyTorch semantics) for validation
# ---------------------------------------------------------------------------
def encoder_reference(x_nchw, raw, fc_w, fc_b):
    x = jnp.asarray(x_nchw)
    for b in range(BLOCKS):
        p = raw[b]
        z = jax.lax.conv_general_dilated(
            x, jnp.asarray(p["w"]), window_strides=(STRIDE, STRIDE),
            padding=((PAD, PAD), (PAD, PAD)),
            dimension_numbers=("NCHW", "OIHW", "NCHW"),
            precision=jax.lax.Precision.HIGHEST)
        z = z + jnp.asarray(p["cb"]).reshape(1, -1, 1, 1)
        s = (jnp.asarray(p["gamma"]) / jnp.sqrt(jnp.asarray(p["var"]) + BN_EPS))
        z = (z - jnp.asarray(p["mean"]).reshape(1, -1, 1, 1)) * s.reshape(1, -1, 1, 1) \
            + jnp.asarray(p["beta"]).reshape(1, -1, 1, 1)
        x = jnp.maximum(z, 0.0)
    # AdaptiveAvgPool2d([2,2]) is the identity on the 2x2 final map.
    flat = x.reshape(x.shape[0], -1)
    y = jnp.dot(flat, jnp.asarray(fc_w).T,
                precision=jax.lax.Precision.HIGHEST) + jnp.asarray(fc_b)
    nrm = jnp.sqrt(jnp.sum(y * y, axis=1, keepdims=True))
    return y / jnp.maximum(nrm, NORM_EPS)


if __name__ == "__main__":
    key = jax.random.PRNGKey(0)
    kx, kp = jax.random.split(key)
    batch = 2
    x = jax.random.normal(kx, (batch, 1, IN_HW, IN_HW), jnp.float32)

    raw, fc_w, fc_b = init_encoder_params(kp)
    params = pack_params(raw, fc_w, fc_b)

    fwd = jax.jit(encoder_forward)
    out = jax.block_until_ready(fwd(x, params))

    assert out.shape == (batch, EMBED_DIM)
    assert bool(jnp.all(jnp.isfinite(out)))
    norms = jnp.linalg.norm(out, axis=-1)
    assert bool(jnp.all(jnp.abs(norms - 1.0) < 1e-4))

    ref = encoder_reference(x, raw, fc_w, fc_b)
    max_err = float(jnp.max(jnp.abs(out - ref)))
    assert max_err < 1e-3, f"mismatch vs pure-JAX reference: {max_err}"

    print("KERNEL_OK")
</pallas_src>

<mosaic_0001>
module attributes {stable_mosaic.version = 11 : i64} {
  func.func @encoder_kernel(%arg0: memref<72x256xf32, #tpu.memory_space<vmem>>, %arg1: memref<8x256x128xf32, #tpu.memory_space<vmem>>, %arg2: memref<4x1x128xf32, #tpu.memory_space<vmem>>, %arg3: memref<128x16xf32, #tpu.memory_space<vmem>>, %arg4: memref<1x16xf32, #tpu.memory_space<vmem>>, %arg5: memref<8x16xf32, #tpu.memory_space<vmem>>, %arg6: memref<40x256xf32, #tpu.memory_space<vmem>>, %arg7: memref<24x256xf32, #tpu.memory_space<vmem>>, %arg8: memref<16x256xf32, #tpu.memory_space<vmem>>) attributes {dimension_semantics = [], scalar_prefetch = 0 : i64, scratch_operands = 3 : i64, tpu.core_type = #tpu.core_type<tc>} {
    %cst = arith.constant 0.000000e+00 : f32
    %0 = vector.broadcast %cst : f32 to vector<8x128xf32>
    %c0 = arith.constant 0 : index
    %c0_0 = arith.constant 0 : index
    %1 = vector.load %arg6[%c0, %c0_0] : memref<40x256xf32, #tpu.memory_space<vmem>>, vector<8x128xf32>
    tpu.vector_store %arg6[%c0, %c0_0], %0 {strides = array<i32>} : memref<40x256xf32, #tpu.memory_space<vmem>>, vector<8x128xf32>,
    %c32 = arith.constant 32 : index
    %c128 = arith.constant 128 : index
    %2 = vector.load %arg6[%c32, %c128] : memref<40x256xf32, #tpu.memory_space<vmem>>, vector<8x128xf32>
    tpu.vector_store %arg6[%c32, %c128], %0 {strides = array<i32>} : memref<40x256xf32, #tpu.memory_space<vmem>>, vector<8x128xf32>,
    %c0_1 = arith.constant 0 : index
    %c0_2 = arith.constant 0 : index
    %3 = vector.load %arg7[%c0_1, %c0_2] : memref<24x256xf32, #tpu.memory_space<vmem>>, vector<8x128xf32>
    tpu.vector_store %arg7[%c0_1, %c0_2], %0 {strides = array<i32>} : memref<24x256xf32, #tpu.memory_space<vmem>>, vector<8x128xf32>,
    %c16 = arith.constant 16 : index
    %c128_3 = arith.constant 128 : index
    %4 = vector.load %arg7[%c16, %c128_3] : memref<24x256xf32, #tpu.memory_space<vmem>>, vector<8x128xf32>
    tpu.vector_store %arg7[%c16, %c128_3], %0 {strides = array<i32>} : memref<24x256xf32, #tpu.memory_space<vmem>>, vector<8x128xf32>,
    %c0_4 = arith.constant 0 : index
    %c0_5 = arith.constant 0 : index
    %5 = vector.load %arg8[%c0_4, %c0_5] : memref<16x256xf32, #tpu.memory_space<vmem>>, vector<8x128xf32>
    tpu.vector_store %arg8[%c0_4, %c0_5], %0 {strides = array<i32>} : memref<16x256xf32, #tpu.memory_space<vmem>>, vector<8x128xf32>,
    %c8 = arith.constant 8 : index
    %c128_6 = arith.constant 128 : index
    %6 = vector.load %arg8[%c8, %c128_6] : memref<16x256xf32, #tpu.memory_space<vmem>>, vector<8x128xf32>
    tpu.vector_store %arg8[%c8, %c128_6], %0 {strides = array<i32>} : memref<16x256xf32, #tpu.memory_space<vmem>>, vector<8x128xf32>,
    %c0_7 = arith.constant 0 : index
    %c0_8 = arith.constant 0 : index
    %7 = vector.load %arg0[%c0_7, %c0_8] : memref<72x256xf32, #tpu.memory_space<vmem>>, vector<64x256xf32>
    %c8_9 = arith.constant 8 : index
    %c0_10 = arith.constant 0 : index
    %8 = vector.load %arg0[%c8_9, %c0_10] : memref<72x256xf32, #tpu.memory_space<vmem>>, vector<64x256xf32>
    %c0_11 = arith.constant 0 : index
    %c0_12 = arith.constant 0 : index
    %c0_13 = arith.constant 0 : index
    %9 = vector.load %arg1[%c0_11, %c0_12, %c0_13] : memref<8x256x128xf32, #tpu.memory_space<vmem>>, vector<1x256x128xf32>
    %10 = vector.shape_cast %9 : vector<1x256x128xf32> to vector<256x128xf32>
    %cst_14 = arith.constant dense<0.000000e+00> : vector<64x128xf32>
    %11 = tpu.matmul %7, %10, %cst_14 {dimension_numbers = #tpu.dot_dimension_numbers<[1], [0], [0], [1], [0, 0, 1, 1], [], []>} : vector<64x256xf32>, vector<256x128xf32>, vector<64x128xf32> -> vector<64x128xf32>
    %c1 = arith.constant 1 : index
    %c0_15 = arith.constant 0 : index
    %c0_16 = arith.constant 0 : index
    %12 = vector.load %arg1[%c1, %c0_15, %c0_16] : memref<8x256x128xf32, #tpu.memory_space<vmem>>, vector<1x256x128xf32>
    %13 = vector.shape_cast %12 : vector<1x256x128xf32> to vector<256x128xf32>
    %cst_17 = arith.constant dense<0.000000e+00> : vector<64x128xf32>
    %14 = tpu.matmul %8, %13, %cst_17 {dimension_numbers = #tpu.dot_dimension_numbers<[1], [0], [0], [1], [0, 0, 1, 1], [], []>} : vector<64x256xf32>, vector<256x128xf32>, vector<64x128xf32> -> vector<64x128xf32>
    %15 = arith.addf %11, %14 : vector<64x128xf32>
    %c0_18 = arith.constant 0 : index
    %c0_19 = arith.constant 0 : index
    %c0_20 = arith.constant 0 : index
    %16 = vector.load %arg2[%c0_18, %c0_19, %c0_20] : memref<4x1x128xf32, #tpu.memory_space<vmem>>, vector<1x1x128xf32>
    %17 = vector.shape_cast %16 : vector<1x1x128xf32> to vector<1x128xf32>
    %18 = vector.broadcast %17 : vector<1x128xf32> to vector<64x128xf32>
    %19 = arith.addf %15, %18 : vector<64x128xf32>
    %cst_21 = arith.constant 0.000000e+00 : f32
    %20 = vector.broadcast %cst_21 : f32 to vector<64x128xf32>
    %21 = arith.maximumf %19, %20 : vector<64x128xf32>
    %22 = vector.extract_strided_slice %21 {offsets = [0, 0], sizes = [8, 128], strides = [1, 1]} : vector<64x128xf32> to vector<8x128xf32>
    %c0_22 = arith.constant 0 : index
    %c128_23 = arith.constant 128 : index
    %23 = vector.load %arg6[%c0_22, %c128_23] : memref<40x256xf32, #tpu.memory_space<vmem>>, vector<8x128xf32>
    tpu.vector_store %arg6[%c0_22, %c128_23], %22 {strides = array<i32>} : memref<40x256xf32, #tpu.memory_space<vmem>>, vector<8x128xf32>,
    %24 = vector.extract_strided_slice %21 {offsets = [8, 0], sizes = [8, 128], strides = [1, 1]} : vector<64x128xf32> to vector<8x128xf32>
    %c8_24 = arith.constant 8 : index
    %c0_25 = arith.constant 0 : index
    %25 = vector.load %arg6[%c8_24, %c0_25] : memref<40x256xf32, #tpu.memory_space<vmem>>, vector<8x128xf32>
    tpu.vector_store %arg6[%c8_24, %c0_25], %24 {strides = array<i32>} : memref<40x256xf32, #tpu.memory_space<vmem>>, vector<8x128xf32>,
    %26 = vector.extract_strided_slice %21 {offsets = [16, 0], sizes = [8, 128], strides = [1, 1]} : vector<64x128xf32> to vector<8x128xf32>
    %c8_26 = arith.constant 8 : index
    %c128_27 = arith.constant 128 : index
    %27 = vector.load %arg6[%c8_26, %c128_27] : memref<40x256xf32, #tpu.memory_space<vmem>>, vector<8x128xf32>
    tpu.vector_store %arg6[%c8_26, %c128_27], %26 {strides = array<i32>} : memref<40x256xf32, #tpu.memory_space<vmem>>, vector<8x128xf32>,
    %28 = vector.extract_strided_slice %21 {offsets = [24, 0], sizes = [8, 128], strides = [1, 1]} : vector<64x128xf32> to vector<8x128xf32>
    %c16_28 = arith.constant 16 : index
    %c0_29 = arith.constant 0 : index
    %29 = vector.load %arg6[%c16_28, %c0_29] : memref<40x256xf32, #tpu.memory_space<vmem>>, vector<8x128xf32>
    tpu.vector_store %arg6[%c16_28, %c0_29], %28 {strides = array<i32>} : memref<40x256xf32, #tpu.memory_space<vmem>>, vector<8x128xf32>,
    %30 = vector.extract_strided_slice %21 {offsets = [32, 0], sizes = [8, 128], strides = [1, 1]} : vector<64x128xf32> to vector<8x128xf32>
    %c16_30 = arith.constant 16 : index
    %c128_31 = arith.constant 128 : index
    %31 = vector.load %arg6[%c16_30, %c128_31] : memref<40x256xf32, #tpu.memory_space<vmem>>, vector<8x128xf32>
    tpu.vector_store %arg6[%c16_30, %c128_31], %30 {strides = array<i32>} : memref<40x256xf32, #tpu.memory_space<vmem>>, vector<8x128xf32>,
    %32 = vector.extract_strided_slice %21 {offsets = [40, 0], sizes = [8, 128], strides = [1, 1]} : vector<64x128xf32> to vector<8x128xf32>
    %c24 = arith.constant 24 : index
    %c0_32 = arith.constant 0 : index
    %33 = vector.load %arg6[%c24, %c0_32] : memref<40x256xf32, #tpu.memory_space<vmem>>, vector<8x128xf32>
    tpu.vector_store %arg6[%c24, %c0_32], %32 {strides = array<i32>} : memref<40x256xf32, #tpu.memory_space<vmem>>, vector<8x128xf32>,
    %34 = vector.extract_strided_slice %21 {offsets = [48, 0], sizes = [8, 128], strides = [1, 1]} : vector<64x128xf32> to vector<8x128xf32>
    %c24_33 = arith.constant 24 : index
    %c128_34 = arith.constant 128 : index
    %35 = vector.load %arg6[%c24_33, %c128_34] : memref<40x256xf32, #tpu.memory_space<vmem>>, vector<8x128xf32>
    tpu.vector_store %arg6[%c24_33, %c128_34], %34 {strides = array<i32>} : memref<40x256xf32, #tpu.memory_space<vmem>>, vector<8x128xf32>,
    %36 = vector.extract_strided_slice %21 {offsets = [56, 0], sizes = [8, 128], strides = [1, 1]} : vector<64x128xf32> to vector<8x128xf32>
    %c32_35 = arith.constant 32 : index
    %c0_36 = arith.constant 0 : index
    %37 = vector.load %arg6[%c32_35, %c0_36] : memref<40x256xf32, #tpu.memory_space<vmem>>, vector<8x128xf32>
    tpu.vector_store %arg6[%c32_35, %c0_36], %36 {strides = array<i32>} : memref<40x256xf32, #tpu.memory_space<vmem>>, vector<8x128xf32>,
    %c0_37 = arith.constant 0 : index
    %c0_38 = arith.constant 0 : index
    %38 = vector.load %arg6[%c0_37, %c0_38] : memref<40x256xf32, #tpu.memory_space<vmem>>, vector<32x256xf32>
    %c8_39 = arith.constant 8 : index
    %c0_40 = arith.constant 0 : index
    %39 = vector.load %arg6[%c8_39, %c0_40] : memref<40x256xf32, #tpu.memory_space<vmem>>, vector<32x256xf32>
    %c2 = arith.constant 2 : index
    %c0_41 = arith.constant 0 : index
    %c0_42 = arith.constant 0 : index
    %40 = vector.load %arg1[%c2, %c0_41, %c0_42] : memref<8x256x128xf32, #tpu.memory_space<vmem>>, vector<1x256x128xf32>
    %41 = vector.shape_cast %40 : vector<1x256x128xf32> to vector<256x128xf32>
    %cst_43 = arith.constant dense<0.000000e+00> : vector<32x128xf32>
    %42 = tpu.matmul %38, %41, %cst_43 {dimension_numbers = #tpu.dot_dimension_numbers<[1], [0], [0], [1], [0, 0, 1, 1], [], []>} : vector<32x256xf32>, vector<256x128xf32>, vector<32x128xf32> -> vector<32x128xf32>
    %c3 = arith.constant 3 : index
    %c0_44 = arith.constant 0 : index
    %c0_45 = arith.constant 0 : index
    %43 = vector.load %arg1[%c3, %c0_44, %c0_45] : memref<8x256x128xf32, #tpu.memory_space<vmem>>, vector<1x256x128xf32>
    %44 = vector.shape_cast %43 : vector<1x256x128xf32> to vector<256x128xf32>
    %cst_46 = arith.constant dense<0.000000e+00> : vector<32x128xf32>
    %45 = tpu.matmul %39, %44, %cst_46 {dimension_numbers = #tpu.dot_dimension_numbers<[1], [0], [0], [1], [0, 0, 1, 1], [], []>} : vector<32x256xf32>, vector<256x128xf32>, vector<32x128xf32> -> vector<32x128xf32>
    %46 = arith.addf %42, %45 : vector<32x128xf32>
    %c1_47 = arith.constant 1 : index
    %c0_48 = arith.constant 0 : index
    %c0_49 = arith.constant 0 : index
    %47 = vector.load %arg2[%c1_47, %c0_48, %c0_49] : memref<4x1x128xf32, #tpu.memory_space<vmem>>, vector<1x1x128xf32>
    %48 = vector.shape_cast %47 : vector<1x1x128xf32> to vector<1x128xf32>
    %49 = vector.broadcast %48 : vector<1x128xf32> to vector<32x128xf32>
    %50 = arith.addf %46, %49 : vector<32x128xf32>
    %cst_50 = arith.constant 0.000000e+00 : f32
    %51 = vector.broadcast %cst_50 : f32 to vector<32x128xf32>
    %52 = arith.maximumf %50, %51 : vector<32x128xf32>
    %53 = vector.extract_strided_slice %52 {offsets = [0, 0], sizes = [8, 128], strides = [1, 1]} : vector<32x128xf32> to vector<8x128xf32>
    %c0_51 = arith.constant 0 : index
    %c128_52 = arith.constant 128 : index
    %54 = vector.load %arg7[%c0_51, %c128_52] : memref<24x256xf32, #tpu.memory_space<vmem>>, vector<8x128xf32>
    tpu.vector_store %arg7[%c0_51, %c128_52], %53 {strides = array<i32>} : memref<24x256xf32, #tpu.memory_space<vmem>>, vector<8x128xf32>,
    %55 = vector.extract_strided_slice %52 {offsets = [8, 0], sizes = [8, 128], strides = [1, 1]} : vector<32x128xf32> to vector<8x128xf32>
    %c8_53 = arith.constant 8 : index
    %c0_54 = arith.constant 0 : index
    %56 = vector.load %arg7[%c8_53, %c0_54] : memref<24x256xf32, #tpu.memory_space<vmem>>, vector<8x128xf32>
    tpu.vector_store %arg7[%c8_53, %c0_54], %55 {strides = array<i32>} : memref<24x256xf32, #tpu.memory_space<vmem>>, vector<8x128xf32>,
    %57 = vector.extract_strided_slice %52 {offsets = [16, 0], sizes = [8, 128], strides = [1, 1]} : vector<32x128xf32> to vector<8x128xf32>
    %c8_55 = arith.constant 8 : index
    %c128_56 = arith.constant 128 : index
    %58 = vector.load %arg7[%c8_55, %c128_56] : memref<24x256xf32, #tpu.memory_space<vmem>>, vector<8x128xf32>
    tpu.vector_store %arg7[%c8_55, %c128_56], %57 {strides = array<i32>} : memref<24x256xf32, #tpu.memory_space<vmem>>, vector<8x128xf32>,
    %59 = vector.extract_strided_slice %52 {offsets = [24, 0], sizes = [8, 128], strides = [1, 1]} : vector<32x128xf32> to vector<8x128xf32>
    %c16_57 = arith.constant 16 : index
    %c0_58 = arith.constant 0 : index
    %60 = vector.load %arg7[%c16_57, %c0_58] : memref<24x256xf32, #tpu.memory_space<vmem>>, vector<8x128xf32>
    tpu.vector_store %arg7[%c16_57, %c0_58], %59 {strides = array<i32>} : memref<24x256xf32, #tpu.memory_space<vmem>>, vector<8x128xf32>,
    %c0_59 = arith.constant 0 : index
    %c0_60 = arith.constant 0 : index
    %61 = vector.load %arg7[%c0_59, %c0_60] : memref<24x256xf32, #tpu.memory_space<vmem>>, vector<16x256xf32>
    %c8_61 = arith.constant 8 : index
    %c0_62 = arith.constant 0 : index
    %62 = vector.load %arg7[%c8_61, %c0_62] : memref<24x256xf32, #tpu.memory_space<vmem>>, vector<16x256xf32>
    %c4 = arith.constant 4 : index
    %c0_63 = arith.constant 0 : index
    %c0_64 = arith.constant 0 : index
    %63 = vector.load %arg1[%c4, %c0_63, %c0_64] : memref<8x256x128xf32, #tpu.memory_space<vmem>>, vector<1x256x128xf32>
    %64 = vector.shape_cast %63 : vector<1x256x128xf32> to vector<256x128xf32>
    %cst_65 = arith.constant dense<0.000000e+00> : vector<16x128xf32>
    %65 = tpu.matmul %61, %64, %cst_65 {dimension_numbers = #tpu.dot_dimension_numbers<[1], [0], [0], [1], [0, 0, 1, 1], [], []>} : vector<16x256xf32>, vector<256x128xf32>, vector<16x128xf32> -> vector<16x128xf32>
    %c5 = arith.constant 5 : index
    %c0_66 = arith.constant 0 : index
    %c0_67 = arith.constant 0 : index
    %66 = vector.load %arg1[%c5, %c0_66, %c0_67] : memref<8x256x128xf32, #tpu.memory_space<vmem>>, vector<1x256x128xf32>
    %67 = vector.shape_cast %66 : vector<1x256x128xf32> to vector<256x128xf32>
    %cst_68 = arith.constant dense<0.000000e+00> : vector<16x128xf32>
    %68 = tpu.matmul %62, %67, %cst_68 {dimension_numbers = #tpu.dot_dimension_numbers<[1], [0], [0], [1], [0, 0, 1, 1], [], []>} : vector<16x256xf32>, vector<256x128xf32>, vector<16x128xf32> -> vector<16x128xf32>
    %69 = arith.addf %65, %68 : vector<16x128xf32>
    %c2_69 = arith.constant 2 : index
    %c0_70 = arith.constant 0 : index
    %c0_71 = arith.constant 0 : index
    %70 = vector.load %arg2[%c2_69, %c0_70, %c0_71] : memref<4x1x128xf32, #tpu.memory_space<vmem>>, vector<1x1x128xf32>
    %71 = vector.shape_cast %70 : vector<1x1x128xf32> to vector<1x128xf32>
    %72 = vector.broadcast %71 : vector<1x128xf32> to vector<16x128xf32>
    %73 = arith.addf %69, %72 : vector<16x128xf32>
    %cst_72 = arith.constant 0.000000e+00 : f32
    %74 = vector.broadcast %cst_72 : f32 to vector<16x128xf32>
    %75 = arith.maximumf %73, %74 : vector<16x128xf32>
    %76 = vector.extract_strided_slice %75 {offsets = [0, 0], sizes = [8, 128], strides = [1, 1]} : vector<16x128xf32> to vector<8x128xf32>
    %c0_73 = arith.constant 0 : index
    %c128_74 = arith.constant 128 : index
    %77 = vector.load %arg8[%c0_73, %c128_74] : memref<16x256xf32, #tpu.memory_space<vmem>>, vector<8x128xf32>
    tpu.vector_store %arg8[%c0_73, %c128_74], %76 {strides = array<i32>} : memref<16x256xf32, #tpu.memory_space<vmem>>, vector<8x128xf32>,
    %78 = vector.extract_strided_slice %75 {offsets = [8, 0], sizes = [8, 128], strides = [1, 1]} : vector<16x128xf32> to vector<8x128xf32>
    %c8_75 = arith.constant 8 : index
    %c0_76 = arith.constant 0 : index
    %79 = vector.load %arg8[%c8_75, %c0_76] : memref<16x256xf32, #tpu.memory_space<vmem>>, vector<8x128xf32>
    tpu.vector_store %arg8[%c8_75, %c0_76], %78 {strides = array<i32>} : memref<16x256xf32, #tpu.memory_space<vmem>>, vector<8x128xf32>,
    %c0_77 = arith.constant 0 : index
    %c0_78 = arith.constant 0 : index
    %80 = vector.load %arg8[%c0_77, %c0_78] : memref<16x256xf32, #tpu.memory_space<vmem>>, vector<8x256xf32>
    %c8_79 = arith.constant 8 : index
    %c0_80 = arith.constant 0 : index
    %81 = vector.load %arg8[%c8_79, %c0_80] : memref<16x256xf32, #tpu.memory_space<vmem>>, vector<8x256xf32>
    %c6 = arith.constant 6 : index
    %c0_81 = arith.constant 0 : index
    %c0_82 = arith.constant 0 : index
    %82 = vector.load %arg1[%c6, %c0_81, %c0_82] : memref<8x256x128xf32, #tpu.memory_space<vmem>>, vector<1x256x128xf32>
    %83 = vector.shape_cast %82 : vector<1x256x128xf32> to vector<256x128xf32>
    %cst_83 = arith.constant dense<0.000000e+00> : vector<8x128xf32>
    %84 = tpu.matmul %80, %83, %cst_83 {dimension_numbers = #tpu.dot_dimension_numbers<[1], [0], [0], [1], [0, 0, 1, 1], [], []>} : vector<8x256xf32>, vector<256x128xf32>, vector<8x128xf32> -> vector<8x128xf32>
    %c7 = arith.constant 7 : index
    %c0_84 = arith.constant 0 : index
    %c0_85 = arith.constant 0 : index
    %85 = vector.load %arg1[%c7, %c0_84, %c0_85] : memref<8x256x128xf32, #tpu.memory_space<vmem>>, vector<1x256x128xf32>
    %86 = vector.shape_cast %85 : vector<1x256x128xf32> to vector<256x128xf32>
    %cst_86 = arith.constant dense<0.000000e+00> : vector<8x128xf32>
    %87 = tpu.matmul %81, %86, %cst_86 {dimension_numbers = #tpu.dot_dimension_numbers<[1], [0], [0], [1], [0, 0, 1, 1], [], []>} : vector<8x256xf32>, vector<256x128xf32>, vector<8x128xf32> -> vector<8x128xf32>
    %88 = arith.addf %84, %87 : vector<8x128xf32>
    %c3_87 = arith.constant 3 : index
    %c0_88 = arith.constant 0 : index
    %c0_89 = arith.constant 0 : index
    %89 = vector.load %arg2[%c3_87, %c0_88, %c0_89] : memref<4x1x128xf32, #tpu.memory_space<vmem>>, vector<1x1x128xf32>
    %90 = vector.shape_cast %89 : vector<1x1x128xf32> to vector<1x128xf32>
    %91 = vector.broadcast %90 : vector<1x128xf32> to vector<8x128xf32>
    %92 = arith.addf %88, %91 : vector<8x128xf32>
    %cst_90 = arith.constant 0.000000e+00 : f32
    %93 = vector.broadcast %cst_90 : f32 to vector<8x128xf32>
    %94 = arith.maximumf %92, %93 : vector<8x128xf32>
    %c0_91 = arith.constant 0 : index
    %c0_92 = arith.constant 0 : index
    %95 = vector.load %arg3[%c0_91, %c0_92] : memref<128x16xf32, #tpu.memory_space<vmem>>, vector<128x16xf32>
    %cst_93 = arith.constant dense<0.000000e+00> : vector<8x16xf32>
    %96 = tpu.matmul %94, %95, %cst_93 {dimension_numbers = #tpu.dot_dimension_numbers<[1], [0], [0], [1], [0, 0, 1, 1], [], []>} : vector<8x128xf32>, vector<128x16xf32>, vector<8x16xf32> -> vector<8x16xf32>
    %c0_94 = arith.constant 0 : index
    %c0_95 = arith.constant 0 : index
    %97 = vector.load %arg4[%c0_94, %c0_95] : memref<1x16xf32, #tpu.memory_space<vmem>>, vector<1x16xf32>
    %98 = vector.broadcast %97 : vector<1x16xf32> to vector<8x16xf32>
    %99 = arith.addf %96, %98 : vector<8x16xf32>
    %100 = arith.mulf %99, %99 : vector<8x16xf32>
    %cst_96 = arith.constant dense<0.000000e+00> : vector<8xf32>
    %101 = vector.multi_reduction <add>, %100, %cst_96 [1] : vector<8x16xf32> to vector<8xf32>
    %102 = vector.shape_cast %101 : vector<8xf32> to vector<8x1xf32>
    %103 = math.sqrt %102 : vector<8x1xf32>
    %cst_97 = arith.constant 9.99999996E-13 : f32
    %104 = vector.broadcast %cst_97 : f32 to vector<8x1xf32>
    %105 = arith.maximumf %103, %104 : vector<8x1xf32>
    %106 = vector.broadcast %105 : vector<8x1xf32> to vector<8x16xf32>
    %107 = arith.divf %99, %106 : vector<8x16xf32>
    %c0_98 = arith.constant 0 : index
    %c0_99 = arith.constant 0 : index
    %108 = vector.load %arg5[%c0_98, %c0_99] : memref<8x16xf32, #tpu.memory_space<vmem>>, vector<8x16xf32>
    tpu.vector_store %arg5[%c0_98, %c0_99], %107 {strides = array<i32>} : memref<8x16xf32, #tpu.memory_space<vmem>>, vector<8x16xf32>,
    return
  }
}

</mosaic_0001>

<bundles_post_ra>
// kernel: encoder_forward.1
= control target key start
LH: loop header
LB: loop body
LE: loop exit
PB: predicated region body
PF: predicated region fallthrough
CT: control target
= control target key end

     0   :  { %10 = vsyncpa [#allocation6], 0  ;;  %s1001_s21 = smov [#allocation5]   ;;  %s1002_s23 = smov 128   ;;  %s1176_s0 = inlined_call_operand.vmem [shape: f32[72,256], index: 0, kind: input, shape index: {}]   ;;  %s1177_s1 = inlined_call_operand.hbm [shape: f32[8,256,128], index: 1, kind: input, shape index: {}]   ;;  %s1178_s2 = inlined_call_operand.vmem [shape: f32[4,1,128], index: 2, kind: input, shape index: {}]   ;;  %s1179_s3 = inlined_call_operand.vmem [shape: f32[128,16], index: 3, kind: input, shape index: {}]   ;;  %s1180_s4 = inlined_call_operand.vmem [shape: f32[1,16], index: 4, kind: input, shape index: {}]   ;;  %s1181_s5 = inlined_call_operand.vmem [shape: f32[8,16], index: 5, kind: output, shape index: {}]  }
   0x1   :  { %s17_s20 = sshll.u32 %s1177_s1, 4  ;;  %s19_s22 = sshll.u32 %s1001_s21, 4  ;;  %s18_s20 = int_to_ptr.hbm [resolvable:$true] %s17_s20  ;;  %s20_s22 = int_to_ptr.vmem [resolvable:$true] %s19_s22 }
   0x2   :  { %s1003_s24 = smov 8  }
   0x3   :  { %25 = dma.hbm_to_vmem [thread:$0]  %s18_s20, 32768, %s20_s22, [#allocation6], %s1002_s23, %s1002_s23, %s1003_s24  }
   0x4   :  { %999 = dma.done.wait [#allocation6], 32768  }
   0x5   :  { %1000 = vsyncadd [#allocation6], 4294934528  ;;  %v89_v0 = vld [vmem:[#allocation5 + $0x78] sm:$0xff]  ;;  %v88_v1 = vld [vmem:[#allocation5 + $0x70] sm:$0xff]  ;;  %vm921_vm0 = vcmask 130048  }
   0x6   :  { %v105_v2 = vld [vmem:[#allocation5 + $0xf8] sm:$0xff]  ;;  %221 = vmatpush.msra.mxu2 %v89_v0  ;;  %v87_v5 = vld [vmem:[#allocation5 + $0x68] sm:$0xff]  ;;  %v104_v6 = vld [vmem:[#allocation5 + $0xf0] sm:$0xff] }
   0x7   :  { %262 = vmatpush.msra.mxu3 %v105_v2  ;;  %v122_v3 = vld [vmem:[#allocation5 + $0x178] sm:$0xff]  ;;  %v121_v7 = vld [vmem:[#allocation5 + $0x170] sm:$0xff]  ;;  %v103_v9 = vld [vmem:[#allocation5 + $0xe8] sm:$0xff] }
   0x8   :  { %v138_v4 = vld [vmem:[#allocation5 + $0x1f8] sm:$0xff]  ;;  %139 = vmatpush.msra.mxu0 %v122_v3  ;;  %v137_v8 = vld [vmem:[#allocation5 + $0x1f0] sm:$0xff]  ;;  %222 = vmatpush.msra.mxu2 %v88_v1  ;;  %v120_v10 = vld [vmem:[#allocation5 + $0x168] sm:$0xff] }
   0x9   :  { %180 = vmatpush.msra.mxu1 %v138_v4  ;;  %263 = vmatpush.msra.mxu3 %v104_v6  ;;  %v86_v11 = vld [vmem:[#allocation5 + $0x60] sm:$0xff]  ;;  %v136_v12 = vld [vmem:[#allocation5 + $0x1e8] sm:$0xff]  ;;  %v85_v16 = vld [vmem:[#allocation5 + $0x58] sm:$0xff] }
   0xa   :  { %140 = vmatpush.msra.mxu0 %v121_v7  ;;  %v102_v13 = vld [vmem:[#allocation5 + $0xe0] sm:$0xff]  ;;  %223 = vmatpush.msra.mxu2 %v87_v5  ;;  %v101_v17 = vld [vmem:[#allocation5 + $0xd8] sm:$0xff]  ;;  %v84_v20 = vld [vmem:[#allocation5 + $0x50] sm:$0xff] }
   0xb   :  { %181 = vmatpush.msra.mxu1 %v137_v8  ;;  %264 = vmatpush.msra.mxu3 %v103_v9  ;;  %v119_v14 = vld [vmem:[#allocation5 + $0x160] sm:$0xff]  ;;  %v118_v18 = vld [vmem:[#allocation5 + $0x158] sm:$0xff]  ;;  %v100_v21 = vld [vmem:[#allocation5 + $0xd0] sm:$0xff] }
   0xc   :  { %v135_v15 = vld [vmem:[#allocation5 + $0x1e0] sm:$0xff]  ;;  %141 = vmatpush.msra.mxu0 %v120_v10  ;;  %224 = vmatpush.msra.mxu2 %v86_v11  ;;  %v134_v19 = vld [vmem:[#allocation5 + $0x1d8] sm:$0xff]  ;;  %v117_v22 = vld [vmem:[#allocation5 + $0x150] sm:$0xff] }
   0xd   :  { %182 = vmatpush.msra.mxu1 %v136_v12  ;;  %265 = vmatpush.msra.mxu3 %v102_v13  ;;  %v133_v23 = vld [vmem:[#allocation5 + $0x1d0] sm:$0xff]  ;;  %v83_v24 = vld [vmem:[#allocation5 + $0x48] sm:$0xff]  ;;  %v82_v28 = vld [vmem:[#allocation5 + $0x40] sm:$0xff] }
   0xe   :  { %142 = vmatpush.msra.mxu0 %v119_v14  ;;  %225 = vmatpush.msra.mxu2 %v85_v16  ;;  %v99_v25 = vld [vmem:[#allocation5 + $0xc8] sm:$0xff]  ;;  %v98_v29 = vld [vmem:[#allocation5 + $0xc0] sm:$0xff]  ;;  %v81_v32 = vld [vmem:[#allocation5 + $0x38] sm:$0xff] }
   0xf   :  { %183 = vmatpush.msra.mxu1 %v135_v15  ;;  %266 = vmatpush.msra.mxu3 %v101_v17  ;;  %v116_v26 = vld [vmem:[#allocation5 + $0x148] sm:$0xff]  ;;  %v115_v30 = vld [vmem:[#allocation5 + $0x140] sm:$0xff]  ;;  %v97_v33 = vld [vmem:[#allocation5 + $0xb8] sm:$0xff] }
  0x10   :  { %143 = vmatpush.msra.mxu0 %v118_v18  ;;  %226 = vmatpush.msra.mxu2 %v84_v20  ;;  %v132_v27 = vld [vmem:[#allocation5 + $0x1c8] sm:$0xff]  ;;  %v131_v31 = vld [vmem:[#allocation5 + $0x1c0] sm:$0xff]  ;;  %v114_v34 = vld [vmem:[#allocation5 + $0x138] sm:$0xff] }
  0x11   :  { %184 = vmatpush.msra.mxu1 %v134_v19  ;;  %267 = vmatpush.msra.mxu3 %v100_v21  ;;  %v130_v35 = vld [vmem:[#allocation5 + $0x1b8] sm:$0xff]  ;;  %v80_v36 = vld [vmem:[#allocation5 + $0x30] sm:$0xff]  ;;  %v79_v40 = vld [vmem:[#allocation5 + $0x28] sm:$0xff] }
  0x12   :  { %144 = vmatpush.msra.mxu0 %v117_v22  ;;  %227 = vmatpush.msra.mxu2 %v83_v24  ;;  %v96_v37 = vld [vmem:[#allocation5 + $0xb0] sm:$0xff]  ;;  %v95_v41 = vld [vmem:[#allocation5 + $0xa8] sm:$0xff]  ;;  %v78_v44 = vld [vmem:[#allocation5 + $0x20] sm:$0xff] }
  0x13   :  { %185 = vmatpush.msra.mxu1 %v133_v23  ;;  %268 = vmatpush.msra.mxu3 %v99_v25  ;;  %v113_v38 = vld [vmem:[#allocation5 + $0x130] sm:$0xff]  ;;  %v112_v42 = vld [vmem:[#allocation5 + $0x128] sm:$0xff]  ;;  %v94_v45 = vld [vmem:[#allocation5 + $0xa0] sm:$0xff] }
  0x14   :  { %145 = vmatpush.msra.mxu0 %v116_v26  ;;  %228 = vmatpush.msra.mxu2 %v82_v28  ;;  %v129_v39 = vld [vmem:[#allocation5 + $0x1b0] sm:$0xff]  ;;  %v128_v43 = vld [vmem:[#allocation5 + $0x1a8] sm:$0xff]  ;;  %v77_v46 = vld [vmem:[#allocation5 + $0x18] sm:$0xff] }
  0x15   :  { %186 = vmatpush.msra.mxu1 %v132_v27  ;;  %269 = vmatpush.msra.mxu3 %v98_v29  ;;  %v111_v47 = vld [vmem:[#allocation5 + $0x120] sm:$0xff]  ;;  %v76_v49 = vld [vmem:[#allocation5 + $0x10] sm:$0xff]  ;;  %v93_v50 = vld [vmem:[#allocation5 + $0x98] sm:$0xff] }
  0x16   :  { %146 = vmatpush.msra.mxu0 %v115_v30  ;;  %229 = vmatpush.msra.mxu2 %v81_v32  ;;  %v127_v48 = vld [vmem:[#allocation5 + $0x1a0] sm:$0xff]  ;;  %v110_v51 = vld [vmem:[#allocation5 + $0x118] sm:$0xff]  ;;  %v92_v53 = vld [vmem:[#allocation5 + $0x90] sm:$0xff] }
  0x17   :  { %187 = vmatpush.msra.mxu1 %v131_v31  ;;  %270 = vmatpush.msra.mxu3 %v97_v33  ;;  %v126_v52 = vld [vmem:[#allocation5 + $0x198] sm:$0xff]  ;;  %v109_v54 = vld [vmem:[#allocation5 + $0x110] sm:$0xff]  ;;  %v75_v56 = vld [vmem:[#allocation5 + $0x8] sm:$0xff] }
  0x18   :  { %147 = vmatpush.msra.mxu0 %v114_v34  ;;  %230 = vmatpush.msra.mxu2 %v80_v36  ;;  %v125_v55 = vld [vmem:[#allocation5 + $0x190] sm:$0xff]  ;;  %v91_v57 = vld [vmem:[#allocation5 + $0x88] sm:$0xff]  ;;  %v74_v60 = vld [vmem:[#allocation5] sm:$0xff] }
  0x19   :  { %188 = vmatpush.msra.mxu1 %v130_v35  ;;  %271 = vmatpush.msra.mxu3 %v96_v37  ;;  %v108_v58 = vld [vmem:[#allocation5 + $0x108] sm:$0xff]  ;;  %v90_v61 = vld [vmem:[#allocation5 + $0x80] sm:$0xff]  ;;  %v58_v2 = vld [vmem:[%s1176_s0 + $0x10] sm:$0xff] }
  0x1a   :  { %148 = vmatpush.msra.mxu0 %v113_v38  ;;  %231 = vmatpush.msra.mxu2 %v79_v40  ;;  %v124_v59 = vld [vmem:[#allocation5 + $0x188] sm:$0xff]  ;;  %v42_v62 = vld [vmem:[%s1176_s0] sm:$0xff]  ;;  %v59_v3 = vld [vmem:[%s1176_s0 + $0x18] sm:$0xff] }
  0x1b   :  { %189 = vmatpush.msra.mxu1 %v129_v39  ;;  %272 = vmatpush.msra.mxu3 %v95_v41  ;;  %v43_v63 = vld [vmem:[%s1176_s0 + $0x8] sm:$0xff]  ;;  %v107_v0 = vld [vmem:[#allocation5 + $0x100] sm:$0xff]  ;;  %v62_v6 = vld [vmem:[%s1176_s0 + $0x30] sm:$0xff] }
  0x1c   :  { %149 = vmatpush.msra.mxu0 %v112_v42  ;;  %232 = vmatpush.msra.mxu2 %v78_v44  ;;  %v123_v1 = vld [vmem:[#allocation5 + $0x180] sm:$0xff]  ;;  %v61_v5 = vld [vmem:[%s1176_s0 + $0x28] sm:$0xff]  ;;  %v63_v7 = vld [vmem:[%s1176_s0 + $0x38] sm:$0xff] }
  0x1d   :  { %190 = vmatpush.msra.mxu1 %v128_v43  ;;  %273 = vmatpush.msra.mxu3 %v94_v45  ;;  %v60_v4 = vld [vmem:[%s1176_s0 + $0x20] sm:$0xff]  ;;  %v65_v9 = vld [vmem:[%s1176_s0 + $0x48] sm:$0xff]  ;;  %v363_v10 = vld [vmem:[#allocation5 + $0x278] sm:$0xff] }
  0x1e   :  { %150 = vmatpush.msra.mxu0 %v111_v47  ;;  %233 = vmatpush.msra.mxu2 %v77_v46  ;;  %v64_v8 = vld [vmem:[%s1176_s0 + $0x40] sm:$0xff]  ;;  %v379_v11 = vld [vmem:[#allocation5 + $0x2f8] sm:$0xff]  ;;  %v362_v14 = vld [vmem:[#allocation5 + $0x270] sm:$0xff] }
  0x1f   :  { %191 = vmatpush.msra.mxu1 %v127_v48  ;;  %274 = vmatpush.msra.mxu3 %v93_v50  ;;  %v396_v12 = vld [vmem:[#allocation5 + $0x378] sm:$0xff]  ;;  %v378_v15 = vld [vmem:[#allocation5 + $0x2f0] sm:$0xff]  ;;  %v361_v18 = vld [vmem:[#allocation5 + $0x268] sm:$0xff] }
  0x20   :  { %151 = vmatpush.msra.mxu0 %v110_v51  ;;  %234 = vmatpush.msra.mxu2 %v76_v49  ;;  %v412_v13 = vld [vmem:[#allocation5 + $0x3f8] sm:$0xff]  ;;  %v395_v16 = vld [vmem:[#allocation5 + $0x370] sm:$0xff]  ;;  %v377_v19 = vld [vmem:[#allocation5 + $0x2e8] sm:$0xff] }
  0x21   :  { %192 = vmatpush.msra.mxu1 %v126_v52  ;;  %275 = vmatpush.msra.mxu3 %v92_v53  ;;  %v411_v17 = vld [vmem:[#allocation5 + $0x3f0] sm:$0xff]  ;;  %v360_v20 = vld [vmem:[#allocation5 + $0x260] sm:$0xff]  ;;  %v67_v23 = vld [vmem:[%s1176_s0 + $0x58] sm:$0xff] }
  0x22   :  { %152 = vmatpush.msra.mxu0 %v109_v54  ;;  %235 = vmatpush.msra.mxu2 %v75_v56  ;;  %v376_v21 = vld [vmem:[#allocation5 + $0x2e0] sm:$0xff]  ;;  %v66_v22 = vld [vmem:[%s1176_s0 + $0x50] sm:$0xff]  ;;  %v394_v24 = vld [vmem:[#allocation5 + $0x368] sm:$0xff] }
  0x23   :  { %193 = vmatpush.msra.mxu1 %v125_v55  ;;  %276 = vmatpush.msra.mxu3 %v91_v57  ;;  %v410_v25 = vld [vmem:[#allocation5 + $0x3e8] sm:$0xff]  ;;  %v359_v26 = vld [vmem:[#allocation5 + $0x258] sm:$0xff]  ;;  %v393_v28 = vld [vmem:[#allocation5 + $0x360] sm:$0xff] }
  0x24   :  { %153 = vmatpush.msra.mxu0 %v108_v58  ;;  %236 = vmatpush.msra.mxu2 %v74_v60  ;;  %v375_v27 = vld [vmem:[#allocation5 + $0x2d8] sm:$0xff]  ;;  %v409_v29 = vld [vmem:[#allocation5 + $0x3e0] sm:$0xff]  ;;  %v358_v30 = vld [vmem:[#allocation5 + $0x250] sm:$0xff] }
  0x25   :  { %194 = vmatpush.msra.mxu1 %v124_v59  ;;  %277 = vmatpush.msra.mxu3 %v90_v61  ;;  %v374_v31 = vld [vmem:[#allocation5 + $0x2d0] sm:$0xff]  ;;  %v392_v32 = vld [vmem:[#allocation5 + $0x358] sm:$0xff]  ;;  %v357_v34 = vld [vmem:[#allocation5 + $0x248] sm:$0xff] }
  0x26   :  { %237 = vmatmul.f32.vlgmr.msra.gmra.mxu2 %v42_v62  ;;  %278 = vmatmul.f32.vlgmr.msra.gmra.mxu3 %v43_v63  ;;  %v408_v33 = vld [vmem:[#allocation5 + $0x3d8] sm:$0xff]  ;;  %v373_v35 = vld [vmem:[#allocation5 + $0x2c8] sm:$0xff]  ;;  %v68_v36 = vld [vmem:[%s1176_s0 + $0x60] sm:$0xff] }
  0x27   :  { %154 = vmatpush.msra.mxu0 %v107_v0  ;;  %195 = vmatpush.msra.mxu1 %v123_v1  ;;  %v69_v37 = vld [vmem:[%s1176_s0 + $0x68] sm:$0xff]  ;;  %v356_v38 = vld [vmem:[#allocation5 + $0x240] sm:$0xff]  ;;  %v391_v40 = vld [vmem:[#allocation5 + $0x350] sm:$0xff] }
  0x28   :  { %155 = vmatmul.f32.vlgmr.msra.gmra.mxu0 %v58_v2  ;;  %196 = vmatmul.f32.vlgmr.msra.gmra.mxu1 %v59_v3  ;;  %v372_v39 = vld [vmem:[#allocation5 + $0x2c0] sm:$0xff]  ;;  %v407_v41 = vld [vmem:[#allocation5 + $0x3d0] sm:$0xff]  ;;  %v355_v42 = vld [vmem:[#allocation5 + $0x238] sm:$0xff] }
  0x29   :  { %471 = vmatpush.msrb.mxu2 %v363_v10  ;;  %500 = vmatpush.msrb.mxu3 %v379_v11  ;;  %v371_v43 = vld [vmem:[#allocation5 + $0x2b8] sm:$0xff]  ;;  %v354_v44 = vld [vmem:[#allocation5 + $0x230] sm:$0xff]  ;;  %v72_v48 = vld [vmem:[%s1176_s0 + $0x80] sm:$0xff] }
  0x2a   :  { %413 = vmatpush.msrb.mxu0 %v396_v12  ;;  %442 = vmatpush.msrb.mxu1 %v412_v13  ;;  %v370_v45 = vld [vmem:[#allocation5 + $0x2b0] sm:$0xff]  ;;  %v71_v47 = vld [vmem:[%s1176_s0 + $0x78] sm:$0xff]  ;;  %v73_v49 = vld [vmem:[%s1176_s0 + $0x88] sm:$0xff] }
  0x2b   :  { %472 = vmatpush.msrb.mxu2 %v362_v14  ;;  %501 = vmatpush.msrb.mxu3 %v378_v15  ;;  %v70_v46 = vld [vmem:[%s1176_s0 + $0x70] sm:$0xff]  ;;  %v390_v50 = vld [vmem:[#allocation5 + $0x348] sm:$0xff]  ;;  %v389_v53 = vld [vmem:[#allocation5 + $0x340] sm:$0xff] }
  0x2c   :  { %414 = vmatpush.msrb.mxu0 %v395_v16  ;;  %443 = vmatpush.msrb.mxu1 %v411_v17  ;;  %v353_v51 = vld [vmem:[#allocation5 + $0x228] sm:$0xff]  ;;  %v352_v54 = vld [vmem:[#allocation5 + $0x220] sm:$0xff]  ;;  %v388_v57 = vld [vmem:[#allocation5 + $0x338] sm:$0xff] }
  0x2d   :  { %473 = vmatpush.msrb.mxu2 %v361_v18  ;;  %502 = vmatpush.msrb.mxu3 %v377_v19  ;;  %v369_v52 = vld [vmem:[#allocation5 + $0x2a8] sm:$0xff]  ;;  %v368_v55 = vld [vmem:[#allocation5 + $0x2a0] sm:$0xff]  ;;  %v351_v58 = vld [vmem:[#allocation5 + $0x218] sm:$0xff] }
  0x2e   :  { %240 = vmatmul.f32.gmra.mxu2 %v58_v2  ;;  %281 = vmatmul.f32.gmra.mxu3 %v59_v3  ;;  %v406_v56 = vld [vmem:[#allocation5 + $0x3c8] sm:$0xff]  ;;  %v367_v59 = vld [vmem:[#allocation5 + $0x298] sm:$0xff]  ;;  %v387_v60 = vld [vmem:[#allocation5 + $0x330] sm:$0xff] }
  0x2f   :  { %474 = vmatpush.msrb.mxu2 %v360_v20  ;;  %503 = vmatpush.msrb.mxu3 %v376_v21  ;;  %v350_v61 = vld [vmem:[#allocation5 + $0x210] sm:$0xff]  ;;  %v386_v63 = vld [vmem:[#allocation5 + $0x328] sm:$0xff]  ;;  %v405_v2 = vld [vmem:[#allocation5 + $0x3c0] sm:$0xff] }
  0x30   :  { %158 = vmatmul.f32.gmra.mxu0 %v60_v4  ;;  %199 = vmatmul.f32.gmra.mxu1 %v61_v5  ;;  %v366_v62 = vld [vmem:[#allocation5 + $0x290] sm:$0xff]  ;;  %v349_v0 = vld [vmem:[#allocation5 + $0x208] sm:$0xff]  ;;  %v385_v3 = vld [vmem:[#allocation5 + $0x320] sm:$0xff] }
  0x31   :  { %415 = vmatpush.msrb.mxu0 %v394_v24  ;;  %444 = vmatpush.msrb.mxu1 %v410_v25  ;;  %v365_v1 = vld [vmem:[#allocation5 + $0x288] sm:$0xff]  ;;  %v403_v10 = vld [vmem:[#allocation5 + $0x3b0] sm:$0xff]  ;;  %v381_v13 = vld [vmem:[#allocation5 + $0x300] sm:$0xff] }
  0x32   :  { %475 = vmatpush.msrb.mxu2 %v359_v26  ;;  %504 = vmatpush.msrb.mxu3 %v375_v27  ;;  %v382_v11 = vld [vmem:[#allocation5 + $0x308] sm:$0xff]  ;;  %v401_v14 = vld [vmem:[#allocation5 + $0x3a0] sm:$0xff]  ;;  %v400_v15 = vld [vmem:[#allocation5 + $0x398] sm:$0xff] }
  0x33   :  { %416 = vmatpush.msrb.mxu0 %v393_v28  ;;  %445 = vmatpush.msrb.mxu1 %v409_v29  ;;  %v402_v12 = vld [vmem:[#allocation5 + $0x3a8] sm:$0xff]  ;;  %v399_v16 = vld [vmem:[#allocation5 + $0x390] sm:$0xff]  ;;  %v397_v18 = vld [vmem:[#allocation5 + $0x380] sm:$0xff] }
  0x34   :  { %476 = vmatpush.msrb.mxu2 %v358_v30  ;;  %505 = vmatpush.msrb.mxu3 %v374_v31  ;;  %v398_v17 = vld [vmem:[#allocation5 + $0x388] sm:$0xff]  ;;  %v1096_v25 = vld [vmem:[%s1178_s2] ss:$0 sm:$0xff] }
  0x35   :  { %417 = vmatpush.msrb.mxu0 %v392_v32  ;;  %446 = vmatpush.msrb.mxu1 %v408_v33 }
  0x36   :  { %243 = vmatmul.f32.gmra.mxu2 %v60_v4  ;;  %284 = vmatmul.f32.gmra.mxu3 %v61_v5  ;;  %v348_v4 = vld [vmem:[#allocation5 + $0x200] sm:$0xff] }
  0x37   :  { %477 = vmatpush.msrb.mxu2 %v357_v34  ;;  %506 = vmatpush.msrb.mxu3 %v373_v35  ;;  %v364_v5 = vld [vmem:[#allocation5 + $0x280] sm:$0xff] }
  0x38   :  { %161 = vmatmul.f32.gmra.mxu0 %v62_v6  ;;  %202 = vmatmul.f32.gmra.mxu1 %v63_v7 }
  0x39   :  { %478 = vmatpush.msrb.mxu2 %v356_v38  ;;  %507 = vmatpush.msrb.mxu3 %v372_v39 }
  0x3a   :  { %418 = vmatpush.msrb.mxu0 %v391_v40  ;;  %447 = vmatpush.msrb.mxu1 %v407_v41 }
  0x3b   :  { %479 = vmatpush.msrb.mxu2 %v355_v42  ;;  %508 = vmatpush.msrb.mxu3 %v371_v43 }
  0x3c   :  { %419 = vmatpush.msrb.mxu0 %v390_v50  ;;  %448 = vmatpush.msrb.mxu1 %v406_v56 }
  0x3d   :  { %480 = vmatpush.msrb.mxu2 %v354_v44  ;;  %509 = vmatpush.msrb.mxu3 %v370_v45 }
  0x3e   :  { %246 = vmatmul.f32.gmra.mxu2 %v62_v6  ;;  %287 = vmatmul.f32.gmra.mxu3 %v63_v7  ;;  %v404_v6 = vld [vmem:[#allocation5 + $0x3b8] sm:$0xff] }
  0x3f   :  { %481 = vmatpush.msrb.mxu2 %v353_v51  ;;  %510 = vmatpush.msrb.mxu3 %v369_v52  ;;  %v384_v7 = vld [vmem:[#allocation5 + $0x318] sm:$0xff] }
  0x40   :  { %164 = vmatmul.f32.gmra.mxu0 %v64_v8  ;;  %205 = vmatmul.f32.gmra.mxu1 %v65_v9 }
  0x41   :  { %420 = vmatpush.msrb.mxu0 %v389_v53  ;;  %482 = vmatpush.msrb.mxu2 %v352_v54 }
  0x42   :  { %511 = vmatpush.msrb.mxu3 %v368_v55  ;;  %449 = vmatpush.msrb.mxu1 %v405_v2  ;;  %v584_v2 = vld [vmem:[#allocation5 + $0x4e8] sm:$0xff] }
  0x43   :  { %421 = vmatpush.msrb.mxu0 %v388_v57  ;;  %483 = vmatpush.msrb.mxu2 %v351_v58 }
  0x44   :  { %512 = vmatpush.msrb.mxu3 %v367_v59  ;;  %450 = vmatpush.msrb.mxu1 %v404_v6 }
  0x45   :  { %422 = vmatpush.msrb.mxu0 %v387_v60  ;;  %484 = vmatpush.msrb.mxu2 %v350_v61 }
  0x46   :  { %249 = vmatmul.f32.gmra.mxu2 %v64_v8  ;;  %290 = vmatmul.f32.gmra.mxu3 %v65_v9  ;;  %v1004_v8 = vmov 0.0   ;;  %v383_v9 = vld [vmem:[#allocation5 + $0x310] sm:$0xff] }
  0x47   :  { %513 = vmatpush.msrb.mxu3 %v366_v62  ;;  %423 = vmatpush.msrb.mxu0 %v386_v63  ;;  %v586_v62 = vld [vmem:[#allocation5 + $0x4f8] sm:$0xff]  ;;  %v585_v63 = vld [vmem:[#allocation5 + $0x4f0] sm:$0xff] }
  0x48   :  { %167 = vmatmul.f32.gmra.mxu0 %v66_v22  ;;  %208 = vmatmul.f32.gmra.mxu1 %v67_v23 }
  0x49   :  { %485 = vmatpush.msrb.mxu2 %v349_v0  ;;  %514 = vmatpush.msrb.mxu3 %v365_v1  ;;  %v570_v0 = vld [vmem:[#allocation5 + $0x478] sm:$0xff] }
  0x4a   :  { %424 = vmatpush.msrb.mxu0 %v385_v3  ;;  %451 = vmatpush.msrb.mxu1 %v403_v10  ;;  %v582_v10 = vld [vmem:[#allocation5 + $0x4d8] sm:$0xff] }
  0x4b   :  { %486 = vmatpush.msrb.mxu2 %v348_v4  ;;  %515 = vmatpush.msrb.mxu3 %v364_v5 }
  0x4c   :  { %425 = vmatpush.msrb.mxu0 %v384_v7  ;;  %452 = vmatpush.msrb.mxu1 %v402_v12  ;;  %v583_v7 = vld [vmem:[#allocation5 + $0x4e0] sm:$0xff] }
  0x4d   :  { %689 = vmatpush.msra.mxu3 %v586_v62  ;;  %666 = vmatpush.msra.mxu2 %v570_v0  ;;  %v596_v62 = vld [vmem:[#allocation5 + $0x540] sm:$0xff] }
  0x4e   :  { %252 = vmatmul.f32.gmra.mxu2 %v66_v22  ;;  %293 = vmatmul.f32.gmra.mxu3 %v67_v23  ;;  %v571_v0 = vld [vmem:[#allocation5 + $0x480] sm:$0xff] }
  0x4f   :  { %426 = vmatpush.msrb.mxu0 %v383_v9  ;;  %453 = vmatpush.msrb.mxu1 %v401_v14 }
  0x50   :  { %170 = vmatmul.f32.gmra.mxu0 %v68_v36  ;;  %211 = vmatmul.f32.gmra.mxu1 %v69_v37 }
  0x51   :  { %427 = vmatpush.msrb.mxu0 %v382_v11  ;;  %454 = vmatpush.msrb.mxu1 %v400_v15 }
  0x52   :  { %690 = vmatpush.msra.mxu3 %v585_v63  ;;  %v559_v63 = vld [vmem:[#allocation5 + $0x420] sm:$0xff] }
  0x53   :  { %428 = vmatpush.msrb.mxu0 %v381_v13  ;;  %455 = vmatpush.msrb.mxu1 %v399_v16 }
  0x54   :  { %691 = vmatpush.msra.mxu3 %v584_v2  ;;  %v595_v2 = vld [vmem:[#allocation5 + $0x538] sm:$0xff] }
  0x55   :  { %456 = vmatpush.msrb.mxu1 %v398_v17 }
  0x56   :  { %255 = vmatmul.f32.gmra.mxu2 %v68_v36  ;;  %296 = vmatmul.f32.gmra.mxu3 %v69_v37 }
  0x57   :  { %457 = vmatpush.msrb.mxu1 %v397_v18  ;;  %692 = vmatpush.msra.mxu3 %v583_v7  ;;  %v617_v7 = vld [vmem:[#allocation5 + $0x5e8] sm:$0xff] }
  0x58   :  { %173 = vmatmul.f32.gmra.mxu0 %v70_v46  ;;  %214 = vmatmul.f32.gmra.mxu1 %v71_v47 }
  0x59   :  { %693 = vmatpush.msra.mxu3 %v582_v10  ;;  %v556_v10 = vld [vmem:[#allocation5 + $0x408] sm:$0xff] }
  0x5e   :  { %258 = vmatmul.f32.gmra.mxu2 %v70_v46  ;;  %299 = vmatmul.f32.gmra.mxu3 %v71_v47 }
  0x60   :  { %176 = vmatmul.f32.gmra.mxu0 %v72_v48  ;;  %217 = vmatmul.f32.gmra.mxu1 %v73_v49 }
  0x66   :  { %487 = vmatmul.f32.vlgmr.msrb.gmra.mxu2 %v1004_v8 }
  0xa5   :  { %v156_v19 = vpop.f32.mrf.mxu0  ;;  %v197_v20 = vpop.f32.mrf.mxu1 }
  0xa6   :  { %v198_v21 = vadd.f32 %v197_v20, %v156_v19 }
  0xa9   :  { %v238_v22 = vpop.f32.mrf.mxu2  ;;  %v279_v23 = vpop.f32.mrf.mxu3 }
  0xaa   :  { %v239_v24 = vadd.f32 %v238_v22, %v198_v21 }
  0xac   :  { %v280_v26 = vadd.f32 %v279_v23, %v239_v24 }
  0xad   :  { %v159_v27 = vpop.f32.mrf.mxu0  ;;  %v200_v28 = vpop.f32.mrf.mxu1 }
  0xae   :  { %v307_v29 = vadd.f32 %v1096_v25, %v280_v26  ;;  %v201_v30 = vadd.f32 %v200_v28, %v159_v27 }
  0xb0   :  { %v315_v31 = vmax.f32 %v307_v29, 0.0 }
  0xb1   :  { %v241_v32 = vpop.f32.mrf.mxu2  ;;  %v282_v33 = vpop.f32.mrf.mxu3 }
  0xb2   :  { %v242_v34 = vadd.f32 %v241_v32, %v201_v30  ;;  %516 = vmatmul.f32.vlgmr.msrb.gmra.mxu3 %v315_v31 }
  0xb4   :  { %v283_v35 = vadd.f32 %v282_v33, %v242_v34 }
  0xb5   :  { %v162_v36 = vpop.f32.mrf.mxu0  ;;  %v203_v37 = vpop.f32.mrf.mxu1 }
  0xb6   :  { %v308_v38 = vadd.f32 %v1096_v25, %v283_v35  ;;  %v204_v39 = vadd.f32 %v203_v37, %v162_v36  ;;  %v569_v36 = vld [vmem:[#allocation5 + $0x470] sm:$0xff] }
  0xb7   :  { %v581_v37 = vld [vmem:[#allocation5 + $0x4d0] sm:$0xff]  ;;  %667 = vmatpush.msra.mxu2 %v569_v36 }
  0xb8   :  { %v316_v40 = vmax.f32 %v308_v38, 0.0  ;;  %694 = vmatpush.msra.mxu3 %v581_v37  ;;  %v568_v38 = vld [vmem:[#allocation5 + $0x468] sm:$0xff]  ;;  %v606_v36 = vld [vmem:[#allocation5 + $0x590] sm:$0xff] }
  0xb9   :  { %v244_v41 = vpop.f32.mrf.mxu2  ;;  %v285_v42 = vpop.f32.mrf.mxu3  ;;  %668 = vmatpush.msra.mxu2 %v568_v38  ;;  %v605_v38 = vld [vmem:[#allocation5 + $0x588] sm:$0xff] }
  0xba   :  { %v245_v43 = vadd.f32 %v244_v41, %v204_v39  ;;  %429 = vmatmul.f32.vlgmr.msrb.gmra.mxu0 %v316_v40  ;;  %490 = vmatmul.f32.gmra.mxu2 %v316_v40  ;;  %v580_v39 = vld [vmem:[#allocation5 + $0x4c8] sm:$0xff]  ;;  %v567_v40 = vld [vmem:[#allocation5 + $0x460] sm:$0xff] }
  0xbb   :  { %695 = vmatpush.msra.mxu3 %v580_v39  ;;  %v579_v41 = vld [vmem:[#allocation5 + $0x4c0] sm:$0xff]  ;;  %669 = vmatpush.msra.mxu2 %v567_v40 }
  0xbc   :  { %v286_v44 = vadd.f32 %v285_v42, %v245_v43  ;;  %v603_v42 = vld [vmem:[#allocation5 + $0x578] sm:$0xff]  ;;  %v604_v40 = vld [vmem:[#allocation5 + $0x580] sm:$0xff] }
  0xbd   :  { %v165_v45 = vpop.f32.mrf.mxu0  ;;  %v206_v46 = vpop.f32.mrf.mxu1  ;;  %620 = vmatpush.msra.mxu0 %v603_v42  ;;  %v566_v43 = vld [vmem:[#allocation5 + $0x458] sm:$0xff]  ;;  %696 = vmatpush.msra.mxu3 %v579_v41 }
  0xbe   :  { %v309_v47 = vadd.f32 %v1096_v25, %v286_v44  ;;  %v207_v48 = vadd.f32 %v206_v46, %v165_v45  ;;  %v578_v44 = vld [vmem:[#allocation5 + $0x4b8] sm:$0xff]  ;;  %670 = vmatpush.msra.mxu2 %v566_v43  ;;  %v565_v45 = vld [vmem:[#allocation5 + $0x450] sm:$0xff] }
  0xbf   :  { %697 = vmatpush.msra.mxu3 %v578_v44  ;;  %v577_v46 = vld [vmem:[#allocation5 + $0x4b0] sm:$0xff] }
  0xc0   :  { %v317_v49 = vmax.f32 %v309_v47, 0.0  ;;  %671 = vmatpush.msra.mxu2 %v565_v45  ;;  %v601_v47 = vld [vmem:[#allocation5 + $0x568] sm:$0xff] }
  0xc1   :  { %v247_v50 = vpop.f32.mrf.mxu2  ;;  %v288_v51 = vpop.f32.mrf.mxu3  ;;  %698 = vmatpush.msra.mxu3 %v577_v46 }
  0xc2   :  { %v248_v52 = vadd.f32 %v247_v50, %v207_v48  ;;  %458 = vmatmul.f32.vlgmr.msrb.gmra.mxu1 %v317_v49  ;;  %519 = vmatmul.f32.gmra.mxu3 %v317_v49  ;;  %v564_v48 = vld [vmem:[#allocation5 + $0x448] sm:$0xff]  ;;  %v600_v50 = vld [vmem:[#allocation5 + $0x560] sm:$0xff] }
  0xc3   :  { %v576_v49 = vld [vmem:[#allocation5 + $0x4a8] sm:$0xff]  ;;  %672 = vmatpush.msra.mxu2 %v564_v48 }
  0xc4   :  { %v289_v53 = vadd.f32 %v288_v51, %v248_v52  ;;  %699 = vmatpush.msra.mxu3 %v576_v49  ;;  %v563_v51 = vld [vmem:[#allocation5 + $0x440] sm:$0xff] }
  0xc5   :  { %v168_v54 = vpop.f32.mrf.mxu0  ;;  %v209_v55 = vpop.f32.mrf.mxu1  ;;  %v575_v52 = vld [vmem:[#allocation5 + $0x4a0] sm:$0xff]  ;;  %673 = vmatpush.msra.mxu2 %v563_v51 }
  0xc6   :  { %v210_v56 = vadd.f32 %v209_v55, %v168_v54  ;;  %v310_v57 = vadd.f32 %v1096_v25, %v289_v53  ;;  %700 = vmatpush.msra.mxu3 %v575_v52  ;;  %v599_v53 = vld [vmem:[#allocation5 + $0x558] sm:$0xff] }
  0xc7   :  { %v562_v54 = vld [vmem:[#allocation5 + $0x438] sm:$0xff] }
  0xc8   :  { %v318_v58 = vmax.f32 %v310_v57, 0.0  ;;  %v574_v55 = vld [vmem:[#allocation5 + $0x498] sm:$0xff]  ;;  %674 = vmatpush.msra.mxu2 %v562_v54  ;;  %v561_v57 = vld [vmem:[#allocation5 + $0x430] sm:$0xff] }
  0xc9   :  { %v250_v59 = vpop.f32.mrf.mxu2  ;;  %v291_v60 = vpop.f32.mrf.mxu3  ;;  %701 = vmatpush.msra.mxu3 %v574_v55 }
  0xca   :  { %v251_v61 = vadd.f32 %v250_v59, %v210_v56  ;;  %432 = vmatmul.f32.gmra.mxu0 %v318_v58  ;;  %493 = vmatmul.f32.gmra.mxu2 %v318_v58  ;;  %v598_v56 = vld [vmem:[#allocation5 + $0x550] sm:$0xff]  ;;  %v597_v59 = vld [vmem:[#allocation5 + $0x548] sm:$0xff] }
  0xcb   :  { %675 = vmatpush.msra.mxu2 %v561_v57  ;;  %v573_v58 = vld [vmem:[#allocation5 + $0x490] sm:$0xff] }
  0xcc   :  { %v292_v1 = vadd.f32 %v291_v60, %v251_v61  ;;  %702 = vmatpush.msra.mxu3 %v573_v58  ;;  %v560_v60 = vld [vmem:[#allocation5 + $0x428] sm:$0xff] }
  0xcd   :  { %v171_v3 = vpop.f32.mrf.mxu0  ;;  %v212_v4 = vpop.f32.mrf.mxu1  ;;  %v572_v61 = vld [vmem:[#allocation5 + $0x488] sm:$0xff]  ;;  %676 = vmatpush.msra.mxu2 %v560_v60 }
  0xce   :  { %v213_v5 = vadd.f32 %v212_v4, %v171_v3  ;;  %v311_v6 = vadd.f32 %v1096_v25, %v292_v1  ;;  %703 = vmatpush.msra.mxu3 %v572_v61  ;;  %v619_v1 = vld [vmem:[#allocation5 + $0x5f8] sm:$0xff]  ;;  %v618_v4 = vld [vmem:[#allocation5 + $0x5f0] sm:$0xff] }
  0xcf   :  { %677 = vmatpush.msra.mxu2 %v559_v63  ;;  %643 = vmatpush.msra.mxu1 %v619_v1  ;;  %v558_v3 = vld [vmem:[#allocation5 + $0x418] sm:$0xff] }
  0xd0   :  { %v319_v9 = vmax.f32 %v311_v6, 0.0  ;;  %704 = vmatpush.msra.mxu3 %v571_v0  ;;  %v557_v6 = vld [vmem:[#allocation5 + $0x410] sm:$0xff] }
  0xd1   :  { %v253_v11 = vpop.f32.mrf.mxu2  ;;  %v294_v12 = vpop.f32.mrf.mxu3  ;;  %678 = vmatpush.msra.mxu2 %v558_v3  ;;  %644 = vmatpush.msra.mxu1 %v618_v4  ;;  %v759_v3 = vld [vmem:[#allocation5 + $0x6f8] sm:$0xff]  ;;  %v758_v4 = vld [vmem:[#allocation5 + $0x6f0] sm:$0xff] }
  0xd2   :  { %v254_v13 = vadd.f32 %v253_v11, %v213_v5  ;;  %461 = vmatmul.f32.gmra.mxu1 %v319_v9  ;;  %522 = vmatmul.f32.gmra.mxu3 %v319_v9  ;;  %v594_v5 = vld [vmem:[#allocation5 + $0x530] sm:$0xff]  ;;  %v593_v9 = vld [vmem:[#allocation5 + $0x528] sm:$0xff]  ;;  %v616_v11 = vld [vmem:[#allocation5 + $0x5e0] sm:$0xff] }
  0xd3   :  { %679 = vmatpush.msra.mxu2 %v557_v6  ;;  %645 = vmatpush.msra.mxu1 %v617_v7  ;;  %v757_v6 = vld [vmem:[#allocation5 + $0x6e8] sm:$0xff]  ;;  %v742_v7 = vld [vmem:[#allocation5 + $0x670] sm:$0xff] }
  0xd4   :  { %v295_v14 = vadd.f32 %v294_v12, %v254_v13  ;;  %v592_v12 = vld [vmem:[#allocation5 + $0x520] sm:$0xff]  ;;  %853 = vmatpush.msrb.mxu3 %v759_v3 }
  0xd5   :  { %v174_v15 = vpop.f32.mrf.mxu0  ;;  %v215_v16 = vpop.f32.mrf.mxu1  ;;  %680 = vmatpush.msra.mxu2 %v556_v10  ;;  %v555_v13 = vld [vmem:[#allocation5 + $0x400] sm:$0xff]  ;;  %646 = vmatpush.msra.mxu1 %v616_v11  ;;  %v776_v10 = vld [vmem:[#allocation5 + $0x778] sm:$0xff] }
  0xd6   :  { %v216_v17 = vadd.f32 %v215_v16, %v174_v15  ;;  %v312_v18 = vadd.f32 %v1096_v25, %v295_v14  ;;  %v615_v14 = vld [vmem:[#allocation5 + $0x5d8] sm:$0xff]  ;;  %v614_v16 = vld [vmem:[#allocation5 + $0x5d0] sm:$0xff]  ;;  %854 = vmatpush.msrb.mxu3 %v758_v4  ;;  %v777_v3 = vld [vmem:[#allocation5 + $0x780] sm:$0xff] }
  0xd7   :  { %681 = vmatpush.msra.mxu2 %v555_v13  ;;  %v591_v15 = vld [vmem:[#allocation5 + $0x518] sm:$0xff]  ;;  %647 = vmatpush.msra.mxu1 %v615_v14  ;;  %v775_v14 = vld [vmem:[#allocation5 + $0x770] sm:$0xff] }
  0xd8   :  { %v320_v19 = vmax.f32 %v312_v18, 0.0  ;;  %v613_v18 = vld [vmem:[#allocation5 + $0x5c8] sm:$0xff]  ;;  %855 = vmatpush.msrb.mxu3 %v757_v6  ;;  %v792_v11 = vld [vmem:[#allocation5 + $0x7f8] sm:$0xff] }
  0xd9   :  { %v256_v20 = vpop.f32.mrf.mxu2  ;;  %v297_v21 = vpop.f32.mrf.mxu3  ;;  %648 = vmatpush.msra.mxu1 %v614_v16  ;;  %v755_v13 = vld [vmem:[#allocation5 + $0x6d8] sm:$0xff]  ;;  %v740_v16 = vld [vmem:[#allocation5 + $0x660] sm:$0xff]  ;;  %v893_v6 = vld [vmem:[%s1179_s3 + $0x68] sm:$0xff] }
  0xda   :  { %v257_v22 = vadd.f32 %v256_v20, %v216_v17  ;;  %435 = vmatmul.f32.gmra.mxu0 %v320_v19  ;;  %496 = vmatmul.f32.gmra.mxu2 %v320_v19  ;;  %v590_v17 = vld [vmem:[#allocation5 + $0x510] sm:$0xff]  ;;  %v589_v19 = vld [vmem:[#allocation5 + $0x508] sm:$0xff]  ;;  %v612_v20 = vld [vmem:[#allocation5 + $0x5c0] sm:$0xff] }
  0xdb   :  { %649 = vmatpush.msra.mxu1 %v613_v18  ;;  %v774_v18 = vld [vmem:[#allocation5 + $0x768] sm:$0xff]  ;;  %v895_v4 = vld [vmem:[%s1179_s3 + $0x78] sm:$0xff] }
  0xdc   :  { %v298_v23 = vadd.f32 %v297_v21, %v257_v22  ;;  %v588_v21 = vld [vmem:[#allocation5 + $0x500] sm:$0xff]  ;;  %v611_v22 = vld [vmem:[#allocation5 + $0x5b8] sm:$0xff] }
  0xdd   :  { %v177_v24 = vpop.f32.mrf.mxu0  ;;  %v218_v26 = vpop.f32.mrf.mxu1  ;;  %650 = vmatpush.msra.mxu1 %v612_v20  ;;  %v739_v20 = vld [vmem:[#allocation5 + $0x658] sm:$0xff] }
  0xde   :  { %v219_v27 = vadd.f32 %v218_v26, %v177_v24  ;;  %v313_v28 = vadd.f32 %v1096_v25, %v298_v23  ;;  %v610_v23 = vld [vmem:[#allocation5 + $0x5b0] sm:$0xff]  ;;  %v609_v24 = vld [vmem:[#allocation5 + $0x5a8] sm:$0xff] }
  0xdf   :  { %651 = vmatpush.msra.mxu1 %v611_v22  ;;  %v773_v22 = vld [vmem:[#allocation5 + $0x760] sm:$0xff] }
  0xe0   :  { %v321_v29 = vmax.f32 %v313_v28, 0.0 }
  0xe1   :  { %v259_v30 = vpop.f32.mrf.mxu2  ;;  %v300_v31 = vpop.f32.mrf.mxu3  ;;  %652 = vmatpush.msra.mxu1 %v610_v23  ;;  %v789_v23 = vld [vmem:[#allocation5 + $0x7e0] sm:$0xff] }
  0xe2   :  { %v260_v32 = vadd.f32 %v259_v30, %v219_v27  ;;  %464 = vmatmul.f32.gmra.mxu1 %v321_v29  ;;  %525 = vmatmul.f32.gmra.mxu3 %v321_v29  ;;  %v608_v29 = vld [vmem:[#allocation5 + $0x5a0] sm:$0xff] }
  0xe3   :  { %682 = vmatmul.f32.vlgmr.msra.gmra.mxu2 %v1004_v8  ;;  %653 = vmatpush.msra.mxu1 %v609_v24  ;;  %v738_v24 = vld [vmem:[#allocation5 + $0x650] sm:$0xff] }
  0xe4   :  { %v301_v33 = vadd.f32 %v300_v31, %v260_v32  ;;  %v967_v32 = vld [vmem:[%s1178_s2 + $0x1] ss:$0 sm:$0xff] }
  0xe5   :  { %654 = vmatpush.msra.mxu1 %v608_v29  ;;  %v737_v29 = vld [vmem:[#allocation5 + $0x648] sm:$0xff] }
  0xe6   :  { %v314_v34 = vadd.f32 %v1096_v25, %v301_v33  ;;  %v602_v25 = vld [vmem:[#allocation5 + $0x570] sm:$0xff]  ;;  %v607_v33 = vld [vmem:[#allocation5 + $0x598] sm:$0xff] }
  0xe7   :  { %621 = vmatpush.msra.mxu0 %v602_v25  ;;  %655 = vmatpush.msra.mxu1 %v607_v33  ;;  %v736_v33 = vld [vmem:[#allocation5 + $0x640] sm:$0xff] }
  0xe8   :  { %v322_v35 = vmax.f32 %v314_v34, 0.0 }
  0xe9   :  { %622 = vmatpush.msra.mxu0 %v601_v47  ;;  %v488_v30 = vpop.f32.mrf.mxu2  ;;  %656 = vmatpush.msra.mxu1 %v606_v36  ;;  %v786_v36 = vld [vmem:[#allocation5 + $0x7c8] sm:$0xff] }
  0xea   :  { %438 = vmatmul.f32.gmra.mxu0 %v322_v35  ;;  %467 = vmatmul.f32.gmra.mxu1 %v1004_v8 }
  0xeb   :  { %623 = vmatpush.msra.mxu0 %v600_v50  ;;  %657 = vmatpush.msra.mxu1 %v605_v38  ;;  %v749_v38 = vld [vmem:[#allocation5 + $0x6a8] sm:$0xff] }
  0xed   :  { %624 = vmatpush.msra.mxu0 %v599_v53  ;;  %658 = vmatpush.msra.mxu1 %v604_v40  ;;  %v785_v40 = vld [vmem:[#allocation5 + $0x7c0] sm:$0xff] }
  0xef   :  { %625 = vmatpush.msra.mxu0 %v598_v56  ;;  %813 = vmatpush.msrb.mxu1 %v792_v11 }
  0xf1   :  { %626 = vmatpush.msra.mxu0 %v597_v59 }
  0xf3   :  { %627 = vmatpush.msra.mxu0 %v596_v62 }
  0xf5   :  { %628 = vmatpush.msra.mxu0 %v595_v2 }
  0xf7   :  { %629 = vmatpush.msra.mxu0 %v594_v5  ;;  %v743_v5 = vld [vmem:[#allocation5 + $0x678] sm:$0xff] }
  0xf8   :  { %833 = vmatpush.msrb.mxu2 %v743_v5  ;;  %v894_v5 = vld [vmem:[%s1179_s3 + $0x70] sm:$0xff] }
  0xf9   :  { %630 = vmatpush.msra.mxu0 %v593_v9  ;;  %v756_v9 = vld [vmem:[#allocation5 + $0x6e0] sm:$0xff] }
  0xfa   :  { %834 = vmatpush.msrb.mxu2 %v742_v7  ;;  %856 = vmatpush.msrb.mxu3 %v756_v9  ;;  %v892_v7 = vld [vmem:[%s1179_s3 + $0x60] sm:$0xff]  ;;  %v891_v9 = vld [vmem:[%s1179_s3 + $0x58] sm:$0xff] }
  0xfb   :  { %631 = vmatpush.msra.mxu0 %v592_v12  ;;  %v741_v12 = vld [vmem:[#allocation5 + $0x668] sm:$0xff] }
  0xfc   :  { %835 = vmatpush.msrb.mxu2 %v741_v12  ;;  %857 = vmatpush.msrb.mxu3 %v755_v13  ;;  %v888_v12 = vld [vmem:[%s1179_s3 + $0x40] sm:$0xff] }
  0xfd   :  { %632 = vmatpush.msra.mxu0 %v591_v15  ;;  %v791_v15 = vld [vmem:[#allocation5 + $0x7f0] sm:$0xff] }
  0xfe   :  { %814 = vmatpush.msrb.mxu1 %v791_v15  ;;  %836 = vmatpush.msrb.mxu2 %v740_v16  ;;  %v887_v16 = vld [vmem:[%s1179_s3 + $0x38] sm:$0xff] }
  0xff   :  { %633 = vmatpush.msra.mxu0 %v590_v17  ;;  %v754_v17 = vld [vmem:[#allocation5 + $0x6d0] sm:$0xff] }
 0x100   :  { %858 = vmatpush.msrb.mxu3 %v754_v17  ;;  %837 = vmatpush.msrb.mxu2 %v739_v20 }
 0x101   :  { %634 = vmatpush.msra.mxu0 %v589_v19  ;;  %v790_v19 = vld [vmem:[#allocation5 + $0x7e8] sm:$0xff] }
 0x102   :  { %815 = vmatpush.msrb.mxu1 %v790_v19  ;;  %838 = vmatpush.msrb.mxu2 %v738_v24 }
 0x103   :  { %635 = vmatpush.msra.mxu0 %v588_v21  ;;  %v753_v21 = vld [vmem:[#allocation5 + $0x6c8] sm:$0xff] }
 0x104   :  { %859 = vmatpush.msrb.mxu3 %v753_v21  ;;  %816 = vmatpush.msrb.mxu1 %v789_v23 }
 0x105   :  { %793 = vmatpush.msrb.mxu0 %v776_v10  ;;  %839 = vmatpush.msrb.mxu2 %v737_v29  ;;  %v889_v10 = vld [vmem:[%s1179_s3 + $0x48] sm:$0xff] }
 0x107   :  { %794 = vmatpush.msrb.mxu0 %v775_v14  ;;  %840 = vmatpush.msrb.mxu2 %v736_v33  ;;  %v886_v33 = vld [vmem:[%s1179_s3 + $0x30] sm:$0xff] }
 0x109   :  { %795 = vmatpush.msrb.mxu0 %v774_v18  ;;  %v968_v18 = vld [vmem:[%s1178_s2 + $0x2] ss:$0 sm:$0xff] }
 0x10b   :  { %796 = vmatpush.msrb.mxu0 %v773_v22 }
 0x135   :  { %v517_v34 = vpop.f32.mrf.mxu3 }
 0x137   :  { %v430_v26 = vpop.f32.mrf.mxu0 }
 0x13d   :  { %v491_v44 = vpop.f32.mrf.mxu2 }
 0x13f   :  { %v459_v27 = vpop.f32.mrf.mxu1 }
 0x140   :  { %v460_v28 = vadd.f32 %v459_v27, %v430_v26  ;;  %v752_v26 = vld [vmem:[#allocation5 + $0x6c0] sm:$0xff]  ;;  %v772_v27 = vld [vmem:[#allocation5 + $0x758] sm:$0xff] }
 0x141   :  { %860 = vmatpush.msrb.mxu3 %v752_v26  ;;  %797 = vmatpush.msrb.mxu0 %v772_v27 }
 0x142   :  { %v489_v31 = vadd.f32 %v488_v30, %v460_v28  ;;  %v788_v28 = vld [vmem:[#allocation5 + $0x7d8] sm:$0xff] }
 0x143   :  { %v751_v30 = vld [vmem:[#allocation5 + $0x6b8] sm:$0xff]  ;;  %817 = vmatpush.msrb.mxu1 %v788_v28 }
 0x144   :  { %v518_v35 = vadd.f32 %v517_v34, %v489_v31  ;;  %v771_v31 = vld [vmem:[#allocation5 + $0x750] sm:$0xff]  ;;  %861 = vmatpush.msrb.mxu3 %v751_v30 }
 0x145   :  { %v520_v45 = vpop.f32.mrf.mxu3  ;;  %v750_v34 = vld [vmem:[#allocation5 + $0x6b0] sm:$0xff]  ;;  %798 = vmatpush.msrb.mxu0 %v771_v31 }
 0x146   :  { %v534_v37 = vadd.f32 %v967_v32, %v518_v35  ;;  %862 = vmatpush.msrb.mxu3 %v750_v34  ;;  %v770_v35 = vld [vmem:[#allocation5 + $0x748] sm:$0xff] }
 0x147   :  { %v433_v41 = vpop.f32.mrf.mxu0  ;;  %799 = vmatpush.msrb.mxu0 %v770_v35  ;;  %v885_v34 = vld [vmem:[%s1179_s3 + $0x28] sm:$0xff]  ;;  %v884_v35 = vld [vmem:[%s1179_s3 + $0x20] sm:$0xff] }
 0x148   :  { %v538_v39 = vmax.f32 %v534_v37, 0.0  ;;  %v735_v37 = vld [vmem:[#allocation5 + $0x638] sm:$0xff]  ;;  %863 = vmatpush.msrb.mxu3 %v749_v38  ;;  %v881_v38 = vld [vmem:[%s1179_s3 + $0x8] sm:$0xff] }
 0x149   :  { %841 = vmatpush.msrb.mxu2 %v735_v37  ;;  %v882_v37 = vld [vmem:[%s1179_s3 + $0x10] sm:$0xff] }
 0x14a   :  { %705 = vmatmul.f32.vlgmr.msra.gmra.mxu3 %v538_v39  ;;  %v769_v39 = vld [vmem:[#allocation5 + $0x740] sm:$0xff] }
 0x14b   :  { %800 = vmatpush.msrb.mxu0 %v769_v39  ;;  %v880_v39 = vld [vmem:[%s1179_s3] sm:$0xff] }
 0x14d   :  { %v494_v52 = vpop.f32.mrf.mxu2 }
 0x14f   :  { %v462_v42 = vpop.f32.mrf.mxu1 }
 0x150   :  { %v463_v43 = vadd.f32 %v462_v42, %v433_v41  ;;  %v734_v41 = vld [vmem:[#allocation5 + $0x630] sm:$0xff]  ;;  %v748_v42 = vld [vmem:[#allocation5 + $0x6a0] sm:$0xff] }
 0x151   :  { %842 = vmatpush.msrb.mxu2 %v734_v41  ;;  %864 = vmatpush.msrb.mxu3 %v748_v42 }
 0x152   :  { %v492_v25 = vadd.f32 %v491_v44, %v463_v43  ;;  %v768_v43 = vld [vmem:[#allocation5 + $0x738] sm:$0xff] }
 0x153   :  { %v784_v44 = vld [vmem:[#allocation5 + $0x7b8] sm:$0xff]  ;;  %801 = vmatpush.msrb.mxu0 %v768_v43 }
 0x154   :  { %v521_v46 = vadd.f32 %v520_v45, %v492_v25  ;;  %v733_v25 = vld [vmem:[#allocation5 + $0x628] sm:$0xff]  ;;  %v747_v45 = vld [vmem:[#allocation5 + $0x698] sm:$0xff] }
 0x155   :  { %v523_v54 = vpop.f32.mrf.mxu3  ;;  %843 = vmatpush.msrb.mxu2 %v733_v25  ;;  %865 = vmatpush.msrb.mxu3 %v747_v45  ;;  %v969_v25 = vld [vmem:[%s1178_s2 + $0x3] ss:$0 sm:$0xff] }
 0x156   :  { %v535_v47 = vadd.f32 %v967_v32, %v521_v46  ;;  %v767_v46 = vld [vmem:[#allocation5 + $0x730] sm:$0xff] }
 0x157   :  { %v436_v49 = vpop.f32.mrf.mxu0  ;;  %802 = vmatpush.msrb.mxu0 %v767_v46 }
 0x158   :  { %v539_v48 = vmax.f32 %v535_v47, 0.0  ;;  %v783_v47 = vld [vmem:[#allocation5 + $0x7b0] sm:$0xff] }
 0x15a   :  { %636 = vmatmul.f32.vlgmr.msra.gmra.mxu0 %v539_v48  ;;  %685 = vmatmul.f32.gmra.mxu2 %v539_v48  ;;  %v732_v48 = vld [vmem:[#allocation5 + $0x620] sm:$0xff] }
 0x15b   :  { %844 = vmatpush.msrb.mxu2 %v732_v48 }
 0x15d   :  { %v497_v61 = vpop.f32.mrf.mxu2 }
 0x15f   :  { %v465_v50 = vpop.f32.mrf.mxu1 }
 0x160   :  { %v466_v51 = vadd.f32 %v465_v50, %v436_v49  ;;  %v746_v49 = vld [vmem:[#allocation5 + $0x690] sm:$0xff]  ;;  %v766_v50 = vld [vmem:[#allocation5 + $0x728] sm:$0xff] }
 0x161   :  { %866 = vmatpush.msrb.mxu3 %v746_v49  ;;  %803 = vmatpush.msrb.mxu0 %v766_v50  ;;  %v970_v49 = vld [vmem:[%s1180_s4] ss:$0 sm:$0xff] }
 0x162   :  { %v495_v53 = vadd.f32 %v494_v52, %v466_v51  ;;  %v782_v51 = vld [vmem:[#allocation5 + $0x7a8] sm:$0xff]  ;;  %v731_v52 = vld [vmem:[#allocation5 + $0x618] sm:$0xff] }
 0x163   :  { %845 = vmatpush.msrb.mxu2 %v731_v52 }
 0x164   :  { %v524_v55 = vadd.f32 %v523_v54, %v495_v53  ;;  %v745_v53 = vld [vmem:[#allocation5 + $0x688] sm:$0xff]  ;;  %v765_v54 = vld [vmem:[#allocation5 + $0x720] sm:$0xff] }
 0x165   :  { %v526_v63 = vpop.f32.mrf.mxu3  ;;  %867 = vmatpush.msrb.mxu3 %v745_v53  ;;  %804 = vmatpush.msrb.mxu0 %v765_v54 }
 0x166   :  { %v536_v56 = vadd.f32 %v967_v32, %v524_v55  ;;  %v781_v55 = vld [vmem:[#allocation5 + $0x7a0] sm:$0xff]  ;;  %v683_v11 = vpop.f32.mrf.mxu2 }
 0x167   :  { %v439_v57 = vpop.f32.mrf.mxu0  ;;  %v468_v58 = vpop.f32.mrf.mxu1 }
 0x168   :  { %v540_v59 = vmax.f32 %v536_v56, 0.0  ;;  %v469_v60 = vadd.f32 %v468_v58, %v439_v57  ;;  %v730_v56 = vld [vmem:[#allocation5 + $0x610] sm:$0xff]  ;;  %v744_v57 = vld [vmem:[#allocation5 + $0x680] sm:$0xff]  ;;  %v764_v58 = vld [vmem:[#allocation5 + $0x718] sm:$0xff] }
 0x169   :  { %846 = vmatpush.msrb.mxu2 %v730_v56  ;;  %868 = vmatpush.msrb.mxu3 %v744_v57 }
 0x16a   :  { %v498_v62 = vadd.f32 %v497_v61, %v469_v60  ;;  %659 = vmatmul.f32.vlgmr.msra.gmra.mxu1 %v540_v59  ;;  %708 = vmatmul.f32.gmra.mxu3 %v540_v59  ;;  %v780_v59 = vld [vmem:[#allocation5 + $0x798] sm:$0xff]  ;;  %v729_v60 = vld [vmem:[#allocation5 + $0x608] sm:$0xff]  ;;  %v763_v61 = vld [vmem:[#allocation5 + $0x710] sm:$0xff] }
 0x16b   :  { %805 = vmatpush.msrb.mxu0 %v764_v58  ;;  %847 = vmatpush.msrb.mxu2 %v729_v60 }
 0x16c   :  { %v527_v0 = vadd.f32 %v526_v63, %v498_v62  ;;  %v779_v62 = vld [vmem:[#allocation5 + $0x790] sm:$0xff]  ;;  %v728_v63 = vld [vmem:[#allocation5 + $0x600] sm:$0xff] }
 0x16d   :  { %806 = vmatpush.msrb.mxu0 %v763_v61  ;;  %848 = vmatpush.msrb.mxu2 %v728_v63 }
 0x16e   :  { %v537_v1 = vadd.f32 %v967_v32, %v527_v0  ;;  %v787_v32 = vld [vmem:[#allocation5 + $0x7d0] sm:$0xff]  ;;  %v762_v0 = vld [vmem:[#allocation5 + $0x708] sm:$0xff]  ;;  %849 = vmatmul.f32.vlgmr.msrb.gmra.mxu2 %v1004_v8 }
 0x16f   :  { %818 = vmatpush.msrb.mxu1 %v787_v32  ;;  %807 = vmatpush.msrb.mxu0 %v762_v0 }
 0x170   :  { %v541_v2 = vmax.f32 %v537_v1, 0.0  ;;  %v778_v1 = vld [vmem:[#allocation5 + $0x788] sm:$0xff] }
 0x171   :  { %819 = vmatpush.msrb.mxu1 %v786_v36  ;;  %v883_v36 = vld [vmem:[%s1179_s3 + $0x18] sm:$0xff] }
 0x172   :  { %639 = vmatmul.f32.gmra.mxu0 %v541_v2  ;;  %662 = vmatmul.f32.gmra.mxu1 %v1004_v8  ;;  %v761_v2 = vld [vmem:[#allocation5 + $0x700] sm:$0xff] }
 0x173   :  { %820 = vmatpush.msrb.mxu1 %v785_v40  ;;  %808 = vmatpush.msrb.mxu0 %v761_v2 }
 0x175   :  { %821 = vmatpush.msrb.mxu1 %v784_v44  ;;  %900 = vmatpush.msra.mxu0 %v895_v4 }
 0x177   :  { %822 = vmatpush.msrb.mxu1 %v783_v47  ;;  %901 = vmatpush.msra.mxu0 %v894_v5 }
 0x179   :  { %823 = vmatpush.msrb.mxu1 %v782_v51  ;;  %902 = vmatpush.msra.mxu0 %v893_v6 }
 0x17b   :  { %824 = vmatpush.msrb.mxu1 %v781_v55  ;;  %903 = vmatpush.msra.mxu0 %v892_v7 }
 0x17d   :  { %825 = vmatpush.msrb.mxu1 %v780_v59  ;;  %904 = vmatpush.msra.mxu0 %v891_v9 }
 0x17f   :  { %826 = vmatpush.msrb.mxu1 %v779_v62 }
 0x181   :  { %827 = vmatpush.msrb.mxu1 %v778_v1 }
 0x183   :  { %828 = vmatpush.msrb.mxu1 %v777_v3 }
 0x184   :  { %829 = vmatmul.f32.vlgmr.msrb.gmra.mxu1 %v1004_v8  ;;  %v890_v8 = vld [vmem:[%s1179_s3 + $0x50] sm:$0xff] }
 0x185   :  { %905 = vmatpush.msra.mxu0 %v890_v8 }
 0x187   :  { %906 = vmatpush.msra.mxu0 %v889_v10 }
 0x189   :  { %907 = vmatpush.msra.mxu0 %v888_v12 }
 0x18b   :  { %908 = vmatpush.msra.mxu0 %v887_v16 }
 0x18d   :  { %909 = vmatpush.msra.mxu0 %v886_v33 }
 0x18f   :  { %910 = vmatpush.msra.mxu0 %v885_v34 }
 0x191   :  { %911 = vmatpush.msra.mxu0 %v884_v35 }
 0x193   :  { %912 = vmatpush.msra.mxu0 %v883_v36 }
 0x195   :  { %913 = vmatpush.msra.mxu0 %v882_v37 }
 0x197   :  { %914 = vmatpush.msra.mxu0 %v881_v38 }
 0x199   :  { %915 = vmatpush.msra.mxu0 %v880_v39 }
 0x1cd   :  { %v706_v19 = vpop.f32.mrf.mxu3 }
 0x1d7   :  { %v637_v13 = vpop.f32.mrf.mxu0 }
 0x1dd   :  { %v686_v27 = vpop.f32.mrf.mxu2 }
 0x1e7   :  { %v660_v14 = vpop.f32.mrf.mxu1 }
 0x1e8   :  { %v661_v15 = vadd.f32 %v660_v14, %v637_v13 }
 0x1ea   :  { %v684_v17 = vadd.f32 %v683_v11, %v661_v15 }
 0x1ec   :  { %v707_v20 = vadd.f32 %v706_v19, %v684_v17 }
 0x1ed   :  { %v709_v29 = vpop.f32.mrf.mxu3 }
 0x1ee   :  { %v717_v21 = vadd.f32 %v968_v18, %v707_v20 }
 0x1ef   :  { %v640_v22 = vpop.f32.mrf.mxu0  ;;  %v663_v23 = vpop.f32.mrf.mxu1 }
 0x1f0   :  { %v719_v24 = vmax.f32 %v717_v21, 0.0  ;;  %v664_v26 = vadd.f32 %v663_v23, %v640_v22 }
 0x1f1   :  { %v850_v42 = vpop.f32.mrf.mxu2 }
 0x1f2   :  { %v687_v28 = vadd.f32 %v686_v27, %v664_v26  ;;  %869 = vmatmul.f32.vlgmr.msrb.gmra.mxu3 %v719_v24 }
 0x1f4   :  { %v710_v30 = vadd.f32 %v709_v29, %v687_v28 }
 0x1f6   :  { %v718_v31 = vadd.f32 %v968_v18, %v710_v30 }
 0x1f8   :  { %v720_v32 = vmax.f32 %v718_v31, 0.0 }
 0x1fa   :  { %809 = vmatmul.f32.vlgmr.msrb.gmra.mxu0 %v720_v32 }
 0x201   :  { %v830_v40 = vpop.f32.mrf.mxu1 }
 0x275   :  { %v870_v45 = vpop.f32.mrf.mxu3 }
 0x277   :  { %v810_v41 = vpop.f32.mrf.mxu0 }
 0x278   :  { %v831_v43 = vadd.f32 %v830_v40, %v810_v41 }
 0x27a   :  { %v851_v44 = vadd.f32 %v850_v42, %v831_v43 }
 0x27c   :  { %v871_v46 = vadd.f32 %v870_v45, %v851_v44 }
 0x27e   :  { %v878_v47 = vadd.f32 %v969_v25, %v871_v46 }
 0x280   :  { %v879_v48 = vmax.f32 %v878_v47, 0.0 }
 0x282   :  { %916 = vmatmul.f32.vlgmr.msra.gmra.mxu0 %v879_v48 }
 0x2ff   :  { %v917_v50 = vpop.f32.mrf.mxu0 }
 0x300   :  { %v918_v51 = vadd.f32 %v970_v49, %v917_v50 }
 0x302   :  { %v920_v52 = vmul.f32 %v918_v51, %v918_v51 }
 0x304   :  { %v922_v53 = vsel %vm921_vm0, %v920_v52, 0.0 }
 0x305   :  { %923 = vadd.xlane.f32.xlu0 %v922_v53 }
 0x378   :  { %v924_v54 = vpop.xlane.xlu0 %923 }
 0x379   :  { %971 = vrsqrt.f32 %v924_v54  ;;  %vm932_vm1 = vcmp.eq.f32.partialorder %v924_v54, inf  ;;  %v935_v62 = vand.u32 2147483648, %v924_v54  ;;  %vm934_vm2 = vcmp.eq.f32.partialorder %v924_v54, 0.0 }
 0x37f   :  { %v972_v55 = vpop.eup %971 }
 0x380   :  { %v926_v56 = vmul.f32 %v972_v55, %v924_v54 }
 0x382   :  { %v927_v57 = vmul.f32 %v972_v55, %v926_v56 }
 0x384   :  { %v928_v58 = vmul.f32 0.5, %v927_v57 }
 0x386   :  { %v929_v59 = vsub.f32 1.5, %v928_v58 }
 0x388   :  { %v930_v60 = vmul.f32 %v972_v55, %v929_v59 }
 0x38a   :  { %v931_v61 = vmul.f32 %v930_v60, %v924_v54 }
 0x38c   :  { %v933_v63 = vsel %vm932_vm1, %v924_v54, %v931_v61 }
 0x38d   :  { %v936_v0 = vsel %vm934_vm2, %v935_v62, %v933_v63 }
 0x38e   :  { %v937_v1 = vmax.f32 %v936_v0, 1e-12 }
 0x390   :  { %973 = vrcp.f32 %v937_v1  ;;  %v949_v5 = vand.u32 2147483648, %v937_v1  ;;  %v947_v7 = vand.u32 2147483647, %v937_v1  ;;  %vm943_vm4 = vweird.f32 %v937_v1 }
 0x392   :  { %v950_v8 = vor.u32 1.1754944e-38, %v949_v5  ;;  %vm948_vm6 = vcmp.eq.f32.partialorder %v947_v7, 8.507059e+37 }
 0x396   :  { %v974_v2 = vpop.eup %973 }
 0x397   :  { %v939_v3 = vmul.f32 %v974_v2, %v937_v1  ;;  %vm944_vm3 = vweird.f32 %v974_v2 }
 0x398   :  { %vm945_vm5 = vmor %vm943_vm4, %vm944_vm3 }
 0x399   :  { %v940_v4 = vsub.f32 1.0, %v939_v3 }
 0x39b   :  { %v941_v6 = vmul.f32 %v974_v2, %v940_v4 }
 0x39d   :  { %v942_v9 = vadd.f32 %v974_v2, %v941_v6 }
 0x39f   :  { %v946_v10 = vsel %vm945_vm5, %v974_v2, %v942_v9 }
 0x3a0   :  { %v951_v11 = vsel %vm948_vm6, %v950_v8, %v946_v10 }
 0x3a1   :  { %v952_v12 = vmul.f32 %v951_v11, %v918_v51 }
 0x3a3   :  { %953 = vst.msk [vmem:[%s1181_s5] sm:$0xff] %vm921_vm0, %v952_v12 }
 0x3a4   :  { %958 = vsyncpa [#allocation6], 1 }

</bundles_post_ra>
